<compile_context>
chip_gen: v6e
topology: v6e:2x2x1
jax: 0.10.0
libtpu: 0.0.40
codegen_flags: <defaults>
</compile_context>

<pallas_src>
import jax
import jax.numpy as jnp
import numpy as np
from jax.experimental import pallas as pl
from jax.experimental.pallas import tpu as pltpu

EMBED_DIM = 8
HIDDEN_DIM = 32
VOCAB_SIZE = 50
TAGSET_SIZE = 6                     # unused by forward (hidden2tag outputs 6*10 = 60), kept for parity
SEQ_LEN = 30                        # forward flattens 30 tokens into ONE LSTM time step (input = 30*E)
TAG_OUT = 6 * 10
LANES = 128                         # vreg lane width; also equals 4*HIDDEN_DIM here

X_DIM = SEQ_LEN * EMBED_DIM         # 240
ACT_W = HIDDEN_DIM + X_DIM + HIDDEN_DIM   # 304  packed activation slab: [c0 | x | h0]
C0_OFF = 0
X_OFF = HIDDEN_DIM
H0_OFF = HIDDEN_DIM + X_DIM

CONST_ROWS = HIDDEN_DIM + 8         # 40: rows 0:32 = w_tag_pad, row 32 = b_gates, row 33 = b_tag_pad
OUT_W = LANES + 2 * HIDDEN_DIM      # 192: [scores(128) | h1(32) | c1(32)]

TILE_B = 256                        # batch rows per grid step (fills MXU rows on v6e/v7x)
NUM_TILES = 2                       # demo: 2 tiles -> both v7x TensorCores busy


def dgparser_kernel(act_ref, w_gates_ref, consts_ref, out_ref):
    """Fused LSTM-cell step + hidden2tag + log_softmax for one batch tile (weights VMEM-resident)."""
    H = HIDDEN_DIM

    # Biases live in one aligned (8,128) vreg of the constants slab: row 0 = b_gates, row 1 = b_tag.
    bias_blk = consts_ref[H:H + 8, :]
    b_gates = bias_blk[0:1, :]                                          # (1, 128)
    b_tag = bias_blk[1:2, :]                                            # (1, 128)

    # Single fused MXU matmul: [c0 | x | h0] @ [0 ; W_ih ; W_hh] (gate cols ordered i, f, o, g;
    # the c0 rows of w_gates are zero, g-gate columns pre-scaled by 2).
    gates = (jnp.dot(act_ref[...], w_gates_ref[...],
                     preferred_element_type=jnp.float32)
             + b_gates)                                                 # (TILE_B, 128)

    # ONE transcendental pass: sigmoid everywhere, then tanh(x) = 2*sigmoid(2x) - 1 on the g lanes.
    s = jax.nn.sigmoid(gates)
    lane = jax.lax.broadcasted_iota(jnp.int32, gates.shape, 1)
    gate_act = jnp.where(lane < 3 * H, s, 2.0 * s - 1.0)

    i_g = gate_act[:, 0 * H:1 * H]
    f_g = gate_act[:, 1 * H:2 * H]
    o_g = gate_act[:, 2 * H:3 * H]
    g_g = gate_act[:, 3 * H:4 * H]

    c0 = act_ref[:, C0_OFF:C0_OFF + H]                                  # aligned lane slice of the slab
    c1 = f_g * c0 + i_g * g_g                                           # (TILE_B, H)
    h1 = o_g * jnp.tanh(c1)                                             # (TILE_B, H)

    # hidden2tag on a lane-dense 128-wide slab: pad cols of W are 0, pad bias lanes -1e30,
    # so max / logsumexp over the full 128 lanes match the 60-lane result exactly.
    tag = (jnp.dot(h1, consts_ref[0:H, :], preferred_element_type=jnp.float32)
           + b_tag)                                                     # (TILE_B, 128)

    m = jnp.max(tag, axis=-1, keepdims=True)
    z = tag - m
    lse = jnp.log(jnp.sum(jnp.exp(z), axis=-1, keepdims=True))

    # One packed lane-dense output block, written with direct slice stores.
    out_ref[:, 0:LANES] = z - lse                                       # full-vreg lanes 0:128
    out_ref[:, LANES:LANES + H] = h1                                    # lanes 128:160
    out_ref[:, LANES + H:LANES + 2 * H] = c1                            # lanes 160:192


@jax.jit
def dgparser_forward(sentence, kparams, hidden):
    """sentence: (N, SEQ_LEN) int32; hidden: (h0, c0) each (N, HIDDEN_DIM). N % TILE_B == 0."""
    N = sentence.shape[0]
    assert N % TILE_B == 0, "batch must be a multiple of TILE_B"
    h0, c0 = hidden

    # TODO(synk): embedding gather + flatten stays as jitted XLA glue (1.6 KB table); an in-kernel
    # gather would serialize into per-token scalar steps, and allow_input_fusion is left off for safety.
    x = jnp.take(kparams["emb"], sentence, axis=0).reshape(N, X_DIM).astype(jnp.float32)
    act = jnp.concatenate([c0, x, h0], axis=-1)                         # (N, 304) packed slab

    num_tiles = N // TILE_B
    out = pl.pallas_call(
        dgparser_kernel,
        out_shape=jax.ShapeDtypeStruct((N, OUT_W), jnp.float32),
        grid_spec=pltpu.PrefetchScalarGridSpec(
            num_scalar_prefetch=0,
            grid=(num_tiles,),
            in_specs=[
                pl.BlockSpec((TILE_B, ACT_W), lambda i: (i, 0)),        # streamed batch tiles
                pl.BlockSpec((ACT_W, LANES), lambda i: (0, 0)),         # weights stay VMEM-resident
                pl.BlockSpec((CONST_ROWS, LANES), lambda i: (0, 0)),    # stacked small constants
            ],
            out_specs=pl.BlockSpec((TILE_B, OUT_W), lambda i: (i, 0)),
        ),
        compiler_params=pltpu.CompilerParams(dimension_semantics=("parallel",)),
    )(act, kparams["w_gates"], kparams["consts"])

    scores = out[:, :TAG_OUT]
    h1 = out[:, LANES:LANES + HIDDEN_DIM]
    c1 = out[:, LANES + HIDDEN_DIM:LANES + 2 * HIDDEN_DIM]
    return scores, (h1, c1)


def prepare_kernel_params(p):
    """One-time weight prep: fuse + reorder gates to [i,f,o,g], pre-scale g by 2, pad lane-dense,
    zero-pad c0 rows into w_gates, and stack the small constants into one (40,128) slab."""
    H = HIDDEN_DIM
    # PyTorch LSTM gate row order is i, f, g, o -> reorder rows to i, f, o, g.
    reorder = np.concatenate([np.arange(0, 2 * H),        # i, f
                              np.arange(3 * H, 4 * H),    # o
                              np.arange(2 * H, 3 * H)])   # g
    w_ih_r = p["w_ih"][reorder]                            # (128, 240)
    w_hh_r = p["w_hh"][reorder]                            # (128, 32)
    b_r = (p["b_ih"] + p["b_hh"])[reorder]                 # (128,)

    # g-gate columns scaled by 2 so tanh(x) = 2*sigmoid(2x) - 1 needs a single sigmoid in-kernel.
    col_scale = jnp.ones((4 * H,), jnp.float32).at[3 * H:].set(2.0)

    w_gates = jnp.zeros((ACT_W, 4 * H), jnp.float32)       # rows 0:32 stay zero (c0 passthrough lanes)
    w_gates = w_gates.at[X_OFF:X_OFF + X_DIM, :].set(w_ih_r.T)
    w_gates = w_gates.at[H0_OFF:H0_OFF + H, :].set(w_hh_r.T)
    w_gates = w_gates * col_scale[None, :]
    b_gates = b_r * col_scale

    consts = jnp.zeros((CONST_ROWS, LANES), jnp.float32)
    consts = consts.at[:H, :TAG_OUT].set(p["w_tag"].T)     # lane-dense tag weights (pad cols = 0)
    consts = consts.at[H, :].set(b_gates)                  # row 32: fused gate bias
    consts = consts.at[H + 1, :].set(-1e30)                # row 33: tag bias, pad lanes -1e30
    consts = consts.at[H + 1, :TAG_OUT].set(p["b_tag"])

    return {"emb": p["emb"], "w_gates": w_gates, "consts": consts}


def reference_forward(sentence, params, hidden):
    """Pure-JAX reference with PyTorch LSTM/Linear/log_softmax math (standard i,f,g,o order)."""
    emb = params["emb"][sentence]                          # (N, 30, E)
    x = emb.reshape(sentence.shape[0], -1)                 # (N, 240)
    h0, c0 = hidden
    gates = x @ params["w_ih"].T + h0 @ params["w_hh"].T + params["b_ih"] + params["b_hh"]
    H = HIDDEN_DIM
    i = jax.nn.sigmoid(gates[:, 0 * H:1 * H])
    f = jax.nn.sigmoid(gates[:, 1 * H:2 * H])
    g = jnp.tanh(gates[:, 2 * H:3 * H])
    o = jax.nn.sigmoid(gates[:, 3 * H:4 * H])
    c1 = f * c0 + i * g
    h1 = o * jnp.tanh(c1)
    tag = h1 @ params["w_tag"].T + params["b_tag"]
    return jax.nn.log_softmax(tag, axis=1), (h1, c1)


def init_params(key):
    """PyTorch-layout parameters (weights are (out, in); gate rows i, f, g, o)."""
    ks = jax.random.split(key, 7)
    s = 0.1
    return {
        "emb":   s * jax.random.normal(ks[0], (VOCAB_SIZE, EMBED_DIM), jnp.float32),
        "w_ih":  s * jax.random.normal(ks[1], (4 * HIDDEN_DIM, X_DIM), jnp.float32),
        "w_hh":  s * jax.random.normal(ks[2], (4 * HIDDEN_DIM, HIDDEN_DIM), jnp.float32),
        "b_ih":  s * jax.random.normal(ks[3], (4 * HIDDEN_DIM,), jnp.float32),
        "b_hh":  s * jax.random.normal(ks[4], (4 * HIDDEN_DIM,), jnp.float32),
        "w_tag": s * jax.random.normal(ks[5], (TAG_OUT, HIDDEN_DIM), jnp.float32),
        "b_tag": s * jax.random.normal(ks[6], (TAG_OUT,), jnp.float32),
    }


if __name__ == "__main__":
    key = jax.random.PRNGKey(0)
    pkey, skey, hkey1, hkey2 = jax.random.split(key, 4)
    params = init_params(pkey)
    kparams = prepare_kernel_params(params)

    # N independent sentences of 30 token ids each (LSTM input size is 30 * embedding_dim),
    # streamed through the kernel as NUM_TILES tiles of TILE_B rows.
    N = NUM_TILES * TILE_B
    sentences = jax.random.randint(skey, (N, SEQ_LEN), 0, VOCAB_SIZE, dtype=jnp.int32)

    # One (h, c) pair per sentence row (nonzero to exercise the f-gate / c0 path; the module's
    # init_hidden() zeros case is the same code path).
    hidden0 = (0.1 * jax.random.normal(hkey1, (N, HIDDEN_DIM), jnp.float32),
               0.1 * jax.random.normal(hkey2, (N, HIDDEN_DIM), jnp.float32))

    scores, (h1, c1) = dgparser_forward(sentences, kparams, hidden0)
    jax.block_until_ready(scores)
    jax.block_until_ready(h1)
    jax.block_until_ready(c1)

    ref_scores, (ref_h1, ref_c1) = reference_forward(sentences, params, hidden0)
    np.testing.assert_allclose(np.asarray(scores), np.asarray(ref_scores), atol=5e-5, rtol=5e-5)
    np.testing.assert_allclose(np.asarray(h1), np.asarray(ref_h1), atol=5e-5, rtol=5e-5)
    np.testing.assert_allclose(np.asarray(c1), np.asarray(ref_c1), atol=5e-5, rtol=5e-5)

    assert scores.shape == (N, TAG_OUT)
    print("KERNEL_OK")
</pallas_src>

<mosaic_0001>
module attributes {stable_mosaic.version = 11 : i64} {
  func.func @dgparser_kernel(%arg0: i32, %arg1: memref<256x304xf32, #tpu.memory_space<vmem>>, %arg2: memref<304x128xf32, #tpu.memory_space<vmem>>, %arg3: memref<40x128xf32, #tpu.memory_space<vmem>>, %arg4: memref<256x192xf32, #tpu.memory_space<vmem>>) attributes {dimension_semantics = [#tpu.dimension_semantics<parallel>], iteration_bounds = array<i64: 2>, scalar_prefetch = 0 : i64, scratch_operands = 0 : i64, tpu.core_type = #tpu.core_type<tc>, window_params = [{transform_indices = @transform_0, window_bounds = array<i64: 256, 304>}, {pipeline_mode = #tpu.pipeline_mode<synchronous>, transform_indices = @transform_1, window_bounds = array<i64: 304, 128>}, {pipeline_mode = #tpu.pipeline_mode<synchronous>, transform_indices = @transform_2, window_bounds = array<i64: 40, 128>}, {transform_indices = @transform_3, window_bounds = array<i64: 256, 192>}]} {
    %c32 = arith.constant 32 : index
    %c0 = arith.constant 0 : index
    %0 = vector.load %arg3[%c32, %c0] : memref<40x128xf32, #tpu.memory_space<vmem>>, vector<8x128xf32>
    %1 = vector.extract_strided_slice %0 {offsets = [0, 0], sizes = [1, 128], strides = [1, 1]} : vector<8x128xf32> to vector<1x128xf32>
    %2 = vector.extract_strided_slice %0 {offsets = [1, 0], sizes = [1, 128], strides = [1, 1]} : vector<8x128xf32> to vector<1x128xf32>
    %c0_0 = arith.constant 0 : index
    %c0_1 = arith.constant 0 : index
    %3 = vector.load %arg1[%c0_0, %c0_1] : memref<256x304xf32, #tpu.memory_space<vmem>>, vector<256x304xf32>
    %c0_2 = arith.constant 0 : index
    %c0_3 = arith.constant 0 : index
    %4 = vector.load %arg2[%c0_2, %c0_3] : memref<304x128xf32, #tpu.memory_space<vmem>>, vector<304x128xf32>
    %cst = arith.constant dense<0.000000e+00> : vector<256x128xf32>
    %5 = tpu.matmul %3, %4, %cst {dimension_numbers = #tpu.dot_dimension_numbers<[1], [0], [0], [1], [0, 0, 1, 1], [], []>} : vector<256x304xf32>, vector<304x128xf32>, vector<256x128xf32> -> vector<256x128xf32>
    %6 = vector.broadcast %1 : vector<1x128xf32> to vector<256x128xf32>
    %7 = arith.addf %5, %6 : vector<256x128xf32>
    %8 = arith.negf %7 : vector<256x128xf32>
    %9 = math.exp %8 : vector<256x128xf32>
    %cst_4 = arith.constant 1.000000e+00 : f32
    %10 = vector.broadcast %cst_4 : f32 to vector<256x128xf32>
    %11 = arith.addf %10, %9 : vector<256x128xf32>
    %12 = arith.divf %10, %11 : vector<256x128xf32>
    %13 = tpu.iota {dimensions = array<i32: 1>} : vector<256x128xi32>
    %c96_i32 = arith.constant 96 : i32
    %14 = vector.broadcast %c96_i32 : i32 to vector<256x128xi32>
    %15 = arith.cmpi slt, %13, %14 : vector<256x128xi32>
    %cst_5 = arith.constant 2.000000e+00 : f32
    %16 = vector.broadcast %cst_5 : f32 to vector<256x128xf32>
    %17 = arith.mulf %16, %12 : vector<256x128xf32>
    %cst_6 = arith.constant 1.000000e+00 : f32
    %18 = vector.broadcast %cst_6 : f32 to vector<256x128xf32>
    %19 = arith.subf %17, %18 : vector<256x128xf32>
    %20 = arith.select %15, %12, %19 : vector<256x128xi1>, vector<256x128xf32>
    %21 = vector.extract_strided_slice %20 {offsets = [0, 0], sizes = [256, 32], strides = [1, 1]} : vector<256x128xf32> to vector<256x32xf32>
    %22 = vector.extract_strided_slice %20 {offsets = [0, 32], sizes = [256, 32], strides = [1, 1]} : vector<256x128xf32> to vector<256x32xf32>
    %23 = vector.extract_strided_slice %20 {offsets = [0, 64], sizes = [256, 32], strides = [1, 1]} : vector<256x128xf32> to vector<256x32xf32>
    %24 = vector.extract_strided_slice %20 {offsets = [0, 96], sizes = [256, 32], strides = [1, 1]} : vector<256x128xf32> to vector<256x32xf32>
    %c0_7 = arith.constant 0 : index
    %c0_8 = arith.constant 0 : index
    %25 = vector.load %arg1[%c0_7, %c0_8] : memref<256x304xf32, #tpu.memory_space<vmem>>, vector<256x32xf32>
    %26 = arith.mulf %22, %25 : vector<256x32xf32>
    %27 = arith.mulf %21, %24 : vector<256x32xf32>
    %28 = arith.addf %26, %27 : vector<256x32xf32>
    %29 = math.tanh %28 : vector<256x32xf32>
    %30 = arith.mulf %23, %29 : vector<256x32xf32>
    %c0_9 = arith.constant 0 : index
    %c0_10 = arith.constant 0 : index
    %31 = vector.load %arg3[%c0_9, %c0_10] : memref<40x128xf32, #tpu.memory_space<vmem>>, vector<32x128xf32>
    %cst_11 = arith.constant dense<0.000000e+00> : vector<256x128xf32>
    %32 = tpu.matmul %30, %31, %cst_11 {dimension_numbers = #tpu.dot_dimension_numbers<[1], [0], [0], [1], [0, 0, 1, 1], [], []>} : vector<256x32xf32>, vector<32x128xf32>, vector<256x128xf32> -> vector<256x128xf32>
    %33 = vector.broadcast %2 : vector<1x128xf32> to vector<256x128xf32>
    %34 = arith.addf %32, %33 : vector<256x128xf32>
    %cst_12 = arith.constant dense<0xFF800000> : vector<256xf32>
    %35 = vector.multi_reduction <maximumf>, %34, %cst_12 [1] : vector<256x128xf32> to vector<256xf32>
    %36 = vector.shape_cast %35 : vector<256xf32> to vector<256x1xf32>
    %37 = vector.broadcast %36 : vector<256x1xf32> to vector<256x128xf32>
    %38 = arith.subf %34, %37 : vector<256x128xf32>
    %39 = math.exp %38 : vector<256x128xf32>
    %cst_13 = arith.constant dense<0.000000e+00> : vector<256xf32>
    %40 = vector.multi_reduction <add>, %39, %cst_13 [1] : vector<256x128xf32> to vector<256xf32>
    %41 = vector.shape_cast %40 : vector<256xf32> to vector<256x1xf32>
    %42 = math.log %41 : vector<256x1xf32>
    %43 = vector.broadcast %42 : vector<256x1xf32> to vector<256x128xf32>
    %44 = arith.subf %38, %43 : vector<256x128xf32>
    %c0_14 = arith.constant 0 : index
    %c0_15 = arith.constant 0 : index
    %45 = vector.load %arg4[%c0_14, %c0_15] : memref<256x192xf32, #tpu.memory_space<vmem>>, vector<256x128xf32>
    tpu.vector_store %arg4[%c0_14, %c0_15], %44 {strides = array<i32>} : memref<256x192xf32, #tpu.memory_space<vmem>>, vector<256x128xf32>,
    %c0_16 = arith.constant 0 : index
    %c128 = arith.constant 128 : index
    %46 = vector.load %arg4[%c0_16, %c128] : memref<256x192xf32, #tpu.memory_space<vmem>>, vector<256x32xf32>
    tpu.vector_store %arg4[%c0_16, %c128], %30 {strides = array<i32>} : memref<256x192xf32, #tpu.memory_space<vmem>>, vector<256x32xf32>,
    %c0_17 = arith.constant 0 : index
    %c160 = arith.constant 160 : index
    %47 = vector.load %arg4[%c0_17, %c160] : memref<256x192xf32, #tpu.memory_space<vmem>>, vector<256x32xf32>
    tpu.vector_store %arg4[%c0_17, %c160], %28 {strides = array<i32>} : memref<256x192xf32, #tpu.memory_space<vmem>>, vector<256x32xf32>,
    return
  }
  func.func @transform_0(%arg0: i32) -> (i32, i32) {
    %c0_i32 = arith.constant 0 : i32
    %c0_i32_0 = arith.constant 0 : i32
    return %arg0, %c0_i32 : i32, i32
  }
  func.func @transform_1(%arg0: i32) -> (i32, i32) {
    %c0_i32 = arith.constant 0 : i32
    %c0_i32_0 = arith.constant 0 : i32
    %c0_i32_1 = arith.constant 0 : i32
    return %c0_i32, %c0_i32_0 : i32, i32
  }
  func.func @transform_2(%arg0: i32) -> (i32, i32) {
    %c0_i32 = arith.constant 0 : i32
    %c0_i32_0 = arith.constant 0 : i32
    %c0_i32_1 = arith.constant 0 : i32
    return %c0_i32, %c0_i32_0 : i32, i32
  }
  func.func @transform_3(%arg0: i32) -> (i32, i32) {
    %c0_i32 = arith.constant 0 : i32
    %c0_i32_0 = arith.constant 0 : i32
    return %arg0, %c0_i32 : i32, i32
  }
}

</mosaic_0001>

<bundles_post_ra>
// kernel: dgparser_forward.1
= control target key start
LH: loop header
LB: loop body
LE: loop exit
PB: predicated region body
PF: predicated region fallthrough
CT: control target
= control target key end

     0   :  { %s3456_s12 = smov 0   ;;  %s4970_s0 = inlined_call_operand.vmem [shape: f32[512,304], index: 0, kind: input, shape index: {}]   ;;  %s4971_s1 = inlined_call_operand.vmem [shape: f32[304,128], index: 1, kind: input, shape index: {}]   ;;  %s4972_s2 = inlined_call_operand.vmem [shape: f32[40,128], index: 2, kind: input, shape index: {}]   ;;  %s4973_s3 = inlined_call_operand.vmem [shape: f32[512,192], index: 3, kind: output, shape index: {}]  }
   0x1 LB: > { %s2761_s13 = sadd.s32 4294967295, %s3431_s12   ;;  %p2765_p0 = scmp.ge.s32.totalorder %s3431_s12, 1  ;;  %s3431_s12 = sphi %s3456_s12, %s13_s12  }
   0x2   : > { %p139_p1 = scmp.lt.s32.totalorder %s3431_s12, 3 }
   0x4   : > { %p140_p2 = pnand %p2765_p0, %p139_p1 }
   0x6   : > { %143 = sbr.rel (%p140_p2) target bundleno = 1425 (0x591), region = 32 }
   0xb   : > { %v291_v0 = vld [vmem:[%s4971_s1 + $0x78] sm:$0xff]  ;;  %s2766_s16 = sshll.u32 %s2761_s13, 5  ;;  %v3433_v1 = vmov 0.0   ;;  %v290_v2 = vld [vmem:[%s4971_s1 + $0x70] sm:$0xff]  ;;  %v289_v3 = vld [vmem:[%s4971_s1 + $0x68] sm:$0xff]  ;;  %vm318_vm0 = vcmask 392192  }
   0xc   : > { %415 = vmatprep.subr.mxu0 %v3433_v1  ;;  %p166_p3 = scmp.lt.s32.totalorder %s2766_s16, 63  ;;  %v288_v4 = vld [vmem:[%s4971_s1 + $0x60] sm:$0xff]  ;;  %v287_v5 = vld [vmem:[%s4971_s1 + $0x58] sm:$0xff]  ;;  %v313_v6 = vld [vmem:[%s4971_s1 + $0x128] sm:$0xff]  ;;  %s3434_s11 = smov 32   ;;  %vm1964_vm2 = vcmask 261120  }
   0xd   : > { %416 = vmatpush1.msra.mxu0 %v291_v0  ;;  %v286_v7 = vld [vmem:[%s4971_s1 + $0x50] sm:$0xff]  ;;  %2976 = vmatprep.subr.mxu1 %v313_v6  ;;  %v312_v8 = vld [vmem:[%s4971_s1 + $0x120] sm:$0xff]  ;;  %v311_v9 = vld [vmem:[%s4971_s1 + $0x118] sm:$0xff]  ;;  %s3435_s5 = smov 64   ;;  %vm2670_vm3 = vcmask 523520  }
   0xe   : > { %417 = vmatprep.subr.mxu0 %v3433_v1  ;;  %s5027_s16 = smov (!%p166_p3, %s2766_s16), 63  ;;  %2977 = vmatpush3.msra.mxu1 %v313_v6  ;;  %v285_v10 = vld [vmem:[%s4971_s1 + $0x48] sm:$0xff]  ;;  %v310_v11 = vld [vmem:[%s4971_s1 + $0x110] sm:$0xff]  ;;  %v284_v12 = vld [vmem:[%s4971_s1 + $0x40] sm:$0xff] }
   0xf   : > { %418 = vmatpush1.msra.mxu0 %v290_v2  ;;  %s3092_s6 = smul.u32 24, %s5027_s16  ;;  %2978 = vmatprep.subr.mxu1 %v312_v8  ;;  %v309_v13 = vld [vmem:[%s4971_s1 + $0x108] sm:$0xff]  ;;  %v283_v14 = vld [vmem:[%s4971_s1 + $0x38] sm:$0xff]  ;;  %v308_v15 = vld [vmem:[%s4971_s1 + $0x100] sm:$0xff] }
  0x10   : > { %419 = vmatprep.subr.mxu0 %v3433_v1  ;;  %2979 = vmatpush3.msra.mxu1 %v312_v8  ;;  %v282_v16 = vld [vmem:[%s4971_s1 + $0x30] sm:$0xff]  ;;  %v281_v18 = vld [vmem:[%s4971_s1 + $0x28] sm:$0xff]  ;;  %v280_v21 = vld [vmem:[%s4971_s1 + $0x20] sm:$0xff] }
  0x11   : > { %420 = vmatpush1.msra.mxu0 %v289_v3  ;;  %2980 = vmatprep.subr.mxu1 %v311_v9  ;;  %s3516_s19 = scalar_lea.vmem %s4970_s0, %s3092_s6  ;;  %v279_v23 = vld [vmem:[%s4971_s1 + $0x18] sm:$0xff]  ;;  %v278_v25 = vld [vmem:[%s4971_s1 + $0x10] sm:$0xff]  ;;  %v277_v27 = vld [vmem:[%s4971_s1 + $0x8] sm:$0xff]  ;;  %s2901_s6 = sshll.u32 %s5027_s16, 4 }
  0x12   : > { %421 = vmatprep.subr.mxu0 %v3433_v1  ;;  %2981 = vmatpush3.msra.mxu1 %v311_v9  ;;  %v181_v17 = vld [vmem:[%s3516_s19 + $0x8] sm:$0xff]  ;;  %v182_v19 = vld [vmem:[%s3516_s19 + $0x10] sm:$0xff]  ;;  %v188_v22 = vld [vmem:[%s3516_s19 + $0x40] sm:$0xff]  ;;  %s4442_s9 = scalar_lea.vmem %s4973_s3, %s2901_s6 }
  0x13   : > { %422 = vmatpush1.msra.mxu0 %v288_v4  ;;  %2982 = vmatprep.subr.mxu1 %v310_v11  ;;  %v185_v20 = vld [vmem:[%s3516_s19 + $0x28] sm:$0xff]  ;;  %v191_v24 = vld [vmem:[%s3516_s19 + $0x58] sm:$0xff]  ;;  %v194_v26 = vld [vmem:[%s3516_s19 + $0x70] sm:$0xff] }
  0x14   : > { %423 = vmatprep.subr.mxu0 %v3433_v1  ;;  %2983 = vmatpush3.msra.mxu1 %v310_v11  ;;  %v197_v28 = vld [vmem:[%s3516_s19 + $0x88] sm:$0xff]  ;;  %v276_v29 = vld [vmem:[%s4971_s1] sm:$0xff]  ;;  %v307_v31 = vld [vmem:[%s4971_s1 + $0xf8] sm:$0xff] }
  0x15   : > { %424 = vmatpush1.msra.mxu0 %v287_v5  ;;  %2984 = vmatprep.subr.mxu1 %v309_v13  ;;  %v200_v30 = vld [vmem:[%s3516_s19 + $0xa0] sm:$0xff]  ;;  %v203_v32 = vld [vmem:[%s3516_s19 + $0xb8] sm:$0xff]  ;;  %v306_v33 = vld [vmem:[%s4971_s1 + $0xf0] sm:$0xff] }
  0x16   : > { %425 = vmatprep.subr.mxu0 %v3433_v1  ;;  %2985 = vmatpush3.msra.mxu1 %v309_v13  ;;  %v206_v34 = vld [vmem:[%s3516_s19 + $0xd0] sm:$0xff]  ;;  %v305_v35 = vld [vmem:[%s4971_s1 + $0xe8] sm:$0xff]  ;;  %v304_v37 = vld [vmem:[%s4971_s1 + $0xe0] sm:$0xff] }
  0x17   : > { %426 = vmatpush1.msra.mxu0 %v286_v7  ;;  %2986 = vmatprep.subr.mxu1 %v308_v15  ;;  %v209_v36 = vld [vmem:[%s3516_s19 + $0xe8] sm:$0xff]  ;;  %v212_v38 = vld [vmem:[%s3516_s19 + $0x100] sm:$0xff]  ;;  %v303_v39 = vld [vmem:[%s4971_s1 + $0xd8] sm:$0xff] }
  0x18   : > { %427 = vmatprep.subr.mxu0 %v3433_v1  ;;  %479 = vmatprep.mubr.f32.mxu0 %v181_v17  ;;  %v215_v40 = vld [vmem:[%s3516_s19 + $0x118] sm:$0xff]  ;;  %v302_v41 = vld [vmem:[%s4971_s1 + $0xd0] sm:$0xff]  ;;  %v301_v43 = vld [vmem:[%s4971_s1 + $0xc8] sm:$0xff] }
  0x19   : > { %428 = vmatpush1.msra.mxu0 %v285_v10  ;;  %2987 = vmatpush3.msra.mxu1 %v308_v15  ;;  %v218_v42 = vld [vmem:[%s3516_s19 + $0x130] sm:$0xff]  ;;  %v221_v44 = vld [vmem:[%s3516_s19 + $0x148] sm:$0xff]  ;;  %v300_v45 = vld [vmem:[%s4971_s1 + $0xc0] sm:$0xff] }
  0x1a   : > { %429 = vmatprep.subr.mxu0 %v3433_v1  ;;  %2988 = vmatprep.mubr.msk.f32.mxu1 %vm318_vm0, %v182_v19  ;;  %v224_v46 = vld [vmem:[%s3516_s19 + $0x160] sm:$0xff]  ;;  %v299_v47 = vld [vmem:[%s4971_s1 + $0xb8] sm:$0xff]  ;;  %v298_v49 = vld [vmem:[%s4971_s1 + $0xb0] sm:$0xff] }
  0x1b   : > { %430 = vmatpush1.msra.mxu0 %v284_v12  ;;  %2989 = vmatmul.mubr.msk.f32.vlgmr.msra.gmra.mxu1 %vm318_vm0, %v185_v20  ;;  %v227_v48 = vld [vmem:[%s3516_s19 + $0x178] sm:$0xff]  ;;  %v230_v50 = vld [vmem:[%s3516_s19 + $0x190] sm:$0xff]  ;;  %v297_v51 = vld [vmem:[%s4971_s1 + $0xa8] sm:$0xff] }
  0x1c   : > { %431 = vmatprep.subr.mxu0 %v3433_v1  ;;  %2991 = vmatprep.mubr.msk.f32.mxu1 %vm318_vm0, %v188_v22  ;;  %v233_v52 = vld [vmem:[%s3516_s19 + $0x1a8] sm:$0xff]  ;;  %v296_v53 = vld [vmem:[%s4971_s1 + $0xa0] sm:$0xff]  ;;  %v295_v56 = vld [vmem:[%s4971_s1 + $0x98] sm:$0xff] }
  0x1d   : > { %432 = vmatpush1.msra.mxu0 %v283_v14  ;;  %v180_v54 = vld [vmem:[%s3516_s19] sm:$0xff]  ;;  %v183_v57 = vld [vmem:[%s3516_s19 + $0x18] sm:$0xff]  ;;  %v294_v59 = vld [vmem:[%s4971_s1 + $0x90] sm:$0xff] }
  0x1e   : > { %433 = vmatprep.subr.mxu0 %v3433_v1  ;;  %v236_v55 = vld [vmem:[%s3516_s19 + $0x1c0] sm:$0xff]  ;;  %1220 = vrot.lane.b32.xlu0 %v180_v54, %s3434_s11  ;;  %v239_v58 = vld [vmem:[%s3516_s19 + $0x1d8] sm:$0xff]  ;;  %v186_v60 = vld [vmem:[%s3516_s19 + $0x30] sm:$0xff] }
  0x1f   : > { %434 = vmatpush1.msra.mxu0 %v282_v16  ;;  %2992 = vmatmul.mubr.msk.f32.gmra.mxu1 %vm318_vm0, %v191_v24  ;;  %v242_v61 = vld [vmem:[%s3516_s19 + $0x1f0] sm:$0xff]  ;;  %v293_v62 = vld [vmem:[%s4971_s1 + $0x88] sm:$0xff]  ;;  %v292_v2 = vld [vmem:[%s4971_s1 + $0x80] sm:$0xff] }
  0x20   : > { %435 = vmatprep.subr.mxu0 %v3433_v1  ;;  %2994 = vmatprep.mubr.msk.f32.mxu1 %vm318_vm0, %v194_v26  ;;  %v189_v63 = vld [vmem:[%s3516_s19 + $0x48] sm:$0xff]  ;;  %v192_v3 = vld [vmem:[%s3516_s19 + $0x60] sm:$0xff]  ;;  %v195_v6 = vld [vmem:[%s3516_s19 + $0x78] sm:$0xff] }
  0x21   : > { %436 = vmatpush1.msra.mxu0 %v281_v18  ;;  %1222 = vrot.lane.b32.xlu1 %v183_v57, %s3434_s11  ;;  %v245_v0 = vld [vmem:[%s3516_s19 + $0x208] sm:$0xff]  ;;  %v248_v4 = vld [vmem:[%s3516_s19 + $0x220] sm:$0xff]  ;;  %v251_v7 = vld [vmem:[%s3516_s19 + $0x238] sm:$0xff] }
  0x22   : > { %437 = vmatprep.subr.mxu0 %v3433_v1  ;;  %1224 = vrot.lane.b32.xlu0 %v186_v60, %s3434_s11  ;;  %v184_v5 = vld [vmem:[%s3516_s19 + $0x20] sm:$0xff]  ;;  %v198_v8 = vld [vmem:[%s3516_s19 + $0x90] sm:$0xff]  ;;  %v201_v10 = vld [vmem:[%s3516_s19 + $0xa8] sm:$0xff] }
  0x23   : > { %438 = vmatpush1.msra.mxu0 %v280_v21  ;;  %2995 = vmatmul.mubr.msk.f32.gmra.mxu1 %vm318_vm0, %v197_v28  ;;  %v254_v9 = vld [vmem:[%s3516_s19 + $0x250] sm:$0xff]  ;;  %v257_v11 = vld [vmem:[%s3516_s19 + $0x268] sm:$0xff]  ;;  %v204_v12 = vld [vmem:[%s3516_s19 + $0xc0] sm:$0xff] }
  0x24   : > { %439 = vmatprep.subr.mxu0 %v3433_v1  ;;  %2997 = vmatprep.mubr.msk.f32.mxu1 %vm318_vm0, %v200_v30  ;;  %v260_v13 = vld [vmem:[%s3516_s19 + $0x280] sm:$0xff]  ;;  %v190_v14 = vld [vmem:[%s3516_s19 + $0x50] sm:$0xff]  ;;  %v207_v15 = vld [vmem:[%s3516_s19 + $0xd8] sm:$0xff] }
  0x25   : > { %440 = vmatpush1.msra.mxu0 %v279_v23  ;;  %1226 = vrot.lane.b32.xlu1 %v189_v63, %s3434_s11  ;;  %v263_v16 = vld [vmem:[%s3516_s19 + $0x298] sm:$0xff]  ;;  %v3697_v17 = vld [vmem:[%s3516_s19 + $0xf0] sm:$0xff]  ;;  %v193_v19 = vld [vmem:[%s3516_s19 + $0x68] sm:$0xff] }
  0x26   : > { %441 = vmatprep.subr.mxu0 %v3433_v1  ;;  %1228 = vrot.lane.b32.xlu0 %v192_v3, %s3434_s11  ;;  %v266_v18 = vld [vmem:[%s3516_s19 + $0x2b0] sm:$0xff]  ;;  %v3706_v20 = vld [vmem:[%s3516_s19 + $0x108] sm:$0xff]  ;;  %v3711_v22 = vld [vmem:[%s3516_s19 + $0x120] sm:$0xff] }
  0x27   : > { %442 = vmatpush1.msra.mxu0 %v278_v25  ;;  %2998 = vmatmul.mubr.msk.f32.gmra.mxu1 %vm318_vm0, %v203_v32  ;;  %v269_v21 = vld [vmem:[%s3516_s19 + $0x2c8] sm:$0xff]  ;;  %v272_v23 = vld [vmem:[%s3516_s19 + $0x2e0] sm:$0xff]  ;;  %v3721_v25 = vld [vmem:[%s3516_s19 + $0x138] sm:$0xff] }
  0x28   : > { %443 = vmatprep.subr.mxu0 %v3433_v1  ;;  %3000 = vmatprep.mubr.msk.f32.mxu1 %vm318_vm0, %v206_v34  ;;  %v196_v24 = vld [vmem:[%s3516_s19 + $0x80] sm:$0xff]  ;;  %v275_v26 = vld [vmem:[%s3516_s19 + $0x2f8] sm:$0xff]  ;;  %v205_v34 = vld [vmem:[%s3516_s19 + $0xc8] sm:$0xff] }
  0x29   : > { %444 = vmatpush1.msra.mxu0 %v277_v27  ;;  %1230 = vrot.lane.b32.xlu1 %v195_v6, %s3434_s11  ;;  %v3726_v27 = vld [vmem:[%s3516_s19 + $0x150] sm:$0xff]  ;;  %v199_v28 = vld [vmem:[%s3516_s19 + $0x98] sm:$0xff]  ;;  %v3738_v30 = vld [vmem:[%s3516_s19 + $0x180] sm:$0xff] }
  0x2a   : > { %445 = vmatprep.subr.mxu0 %v3433_v1  ;;  %1232 = vrot.lane.b32.xlu0 %v198_v8, %s3434_s11  ;;  %v231_v32 = vld [vmem:[%s3516_s19 + $0x198] sm:$0xff] }
  0x2b   : > { %446 = vmatpush1.msra.mxu0 %v276_v29  ;;  %3001 = vmatmul.mubr.msk.f32.gmra.mxu1 %vm318_vm0, %v209_v36  ;;  %v3735_v29 = vld [vmem:[%s3516_s19 + $0x168] sm:$0xff]  ;;  %v240_v36 = vld [vmem:[%s3516_s19 + $0x1e0] sm:$0xff] }
  0x2c   : > { %447 = vmatprep.subr.mxu0 %v3433_v1  ;;  %3003 = vmatprep.mubr.msk.f32.mxu1 %vm318_vm0, %v212_v38  ;;  %v243_v38 = vld [vmem:[%s3516_s19 + $0x1f8] sm:$0xff] }
  0x2d   : > { %448 = vmatpush2.msra.mxu0 %v307_v31  ;;  %1234 = vrot.lane.b32.xlu1 %v201_v10, %s3434_s11  ;;  %v202_v31 = vld [vmem:[%s3516_s19 + $0xb0] sm:$0xff] }
  0x2e   : > { %449 = vmatprep.subr.mxu0 %v3433_v1  ;;  %1236 = vrot.lane.b32.xlu0 %v204_v12, %s3434_s11 }
  0x2f   : > { %450 = vmatpush2.msra.mxu0 %v306_v33  ;;  %3004 = vmatmul.mubr.msk.f32.gmra.mxu1 %vm318_vm0, %v215_v40  ;;  %v3747_v33 = vld [vmem:[%s3516_s19 + $0x1b0] sm:$0xff]  ;;  %v211_v40 = vld [vmem:[%s3516_s19 + $0xf8] sm:$0xff] }
  0x30   : > { %451 = vmatprep.subr.mxu0 %v3433_v1  ;;  %3006 = vmatprep.mubr.msk.f32.mxu1 %vm318_vm0, %v218_v42  ;;  %v252_v42 = vld [vmem:[%s3516_s19 + $0x240] sm:$0xff] }
  0x31   : > { %452 = vmatpush2.msra.mxu0 %v305_v35  ;;  %1238 = vrot.lane.b32.xlu1 %v207_v15, %s3434_s11  ;;  %v237_v35 = vld [vmem:[%s3516_s19 + $0x1c8] sm:$0xff] }
  0x32   : > { %453 = vmatprep.subr.mxu0 %v3433_v1  ;;  %1240 = vrot.lane.b32.xlu0 %v3697_v17, %s3434_s11 }
  0x33   : > { %454 = vmatpush2.msra.mxu0 %v304_v37  ;;  %3007 = vmatmul.mubr.msk.f32.gmra.mxu1 %vm318_vm0, %v221_v44  ;;  %v208_v37 = vld [vmem:[%s3516_s19 + $0xe0] sm:$0xff]  ;;  %v255_v44 = vld [vmem:[%s3516_s19 + $0x258] sm:$0xff] }
  0x34   : > { %455 = vmatprep.subr.mxu0 %v3433_v1  ;;  %3009 = vmatprep.mubr.msk.f32.mxu1 %vm318_vm0, %v224_v46  ;;  %v217_v46 = vld [vmem:[%s3516_s19 + $0x128] sm:$0xff] }
  0x35   : > { %456 = vmatpush2.msra.mxu0 %v303_v39  ;;  %1242 = vrot.lane.b32.xlu1 %v3706_v20, %s3434_s11  ;;  %v246_v39 = vld [vmem:[%s3516_s19 + $0x210] sm:$0xff] }
  0x36   : > { %457 = vmatprep.subr.mxu0 %v3433_v1  ;;  %1244 = vrot.lane.b32.xlu0 %v3711_v22, %s3434_s11 }
  0x37   : > { %458 = vmatpush2.msra.mxu0 %v302_v41  ;;  %3010 = vmatmul.mubr.msk.f32.gmra.mxu1 %vm318_vm0, %v227_v48  ;;  %v249_v41 = vld [vmem:[%s3516_s19 + $0x228] sm:$0xff]  ;;  %v264_v48 = vld [vmem:[%s3516_s19 + $0x2a0] sm:$0xff] }
  0x38   : > { %459 = vmatprep.subr.mxu0 %v3433_v1  ;;  %3012 = vmatprep.mubr.msk.f32.mxu1 %vm318_vm0, %v230_v50  ;;  %v267_v50 = vld [vmem:[%s3516_s19 + $0x2b8] sm:$0xff] }
  0x39   : > { %460 = vmatpush2.msra.mxu0 %v301_v43  ;;  %1246 = vrot.lane.b32.xlu1 %v3721_v25, %s3434_s11  ;;  %v214_v43 = vld [vmem:[%s3516_s19 + $0x110] sm:$0xff] }
  0x3a   : > { %461 = vmatprep.subr.mxu0 %v3433_v1  ;;  %1248 = vrot.lane.b32.xlu0 %v3726_v27, %s3434_s11 }
  0x3b   : > { %462 = vmatpush2.msra.mxu0 %v300_v45  ;;  %3013 = vmatmul.mubr.msk.f32.gmra.mxu1 %vm318_vm0, %v233_v52  ;;  %v258_v45 = vld [vmem:[%s3516_s19 + $0x270] sm:$0xff]  ;;  %v223_v52 = vld [vmem:[%s3516_s19 + $0x158] sm:$0xff] }
  0x3c   : > { %463 = vmatprep.subr.mxu0 %v3433_v1  ;;  %3015 = vmatprep.mubr.msk.f32.mxu1 %vm318_vm0, %v236_v55  ;;  %v229_v55 = vld [vmem:[%s3516_s19 + $0x188] sm:$0xff] }
  0x3d   : > { %464 = vmatpush2.msra.mxu0 %v299_v47  ;;  %1250 = vrot.lane.b32.xlu1 %v3735_v29, %s3434_s11  ;;  %v261_v47 = vld [vmem:[%s3516_s19 + $0x288] sm:$0xff] }
  0x3e   : > { %465 = vmatprep.subr.mxu0 %v3433_v1  ;;  %1252 = vrot.lane.b32.xlu0 %v3738_v30, %s3434_s11 }
  0x3f   : > { %466 = vmatpush2.msra.mxu0 %v298_v49  ;;  %3016 = vmatmul.mubr.msk.f32.gmra.mxu1 %vm318_vm0, %v239_v58  ;;  %v220_v49 = vld [vmem:[%s3516_s19 + $0x140] sm:$0xff]  ;;  %v238_v58 = vld [vmem:[%s3516_s19 + $0x1d0] sm:$0xff] }
  0x40   : > { %467 = vmatprep.subr.mxu0 %v3433_v1  ;;  %3018 = vmatprep.mubr.msk.f32.mxu1 %vm318_vm0, %v242_v61  ;;  %v247_v61 = vld [vmem:[%s3516_s19 + $0x218] sm:$0xff] }
  0x41   : > { %468 = vmatpush2.msra.mxu0 %v297_v51  ;;  %1254 = vrot.lane.b32.xlu1 %v231_v32, %s3434_s11  ;;  %v270_v51 = vld [vmem:[%s3516_s19 + $0x2d0] sm:$0xff] }
  0x42   : > { %469 = vmatprep.subr.mxu0 %v3433_v1  ;;  %1256 = vrot.lane.b32.xlu0 %v3747_v33, %s3434_s11 }
  0x43   : > { %470 = vmatpush2.msra.mxu0 %v296_v53  ;;  %3019 = vmatmul.mubr.msk.f32.gmra.mxu1 %vm318_vm0, %v245_v0  ;;  %v273_v53 = vld [vmem:[%s3516_s19 + $0x2e8] sm:$0xff]  ;;  %v256_v0 = vld [vmem:[%s3516_s19 + $0x260] sm:$0xff] }
  0x44   : > { %471 = vmatprep.subr.mxu0 %v3433_v1  ;;  %3021 = vmatprep.mubr.msk.f32.mxu1 %vm318_vm0, %v248_v4  ;;  %v265_v4 = vld [vmem:[%s3516_s19 + $0x2a8] sm:$0xff] }
  0x45   : > { %472 = vmatpush2.msra.mxu0 %v295_v56  ;;  %1258 = vrot.lane.b32.xlu1 %v237_v35, %s3434_s11  ;;  %v232_v56 = vld [vmem:[%s3516_s19 + $0x1a0] sm:$0xff] }
  0x46   : > { %473 = vmatprep.subr.mxu0 %v3433_v1  ;;  %1260 = vrot.lane.b32.xlu0 %v240_v36, %s3434_s11 }
  0x47   : > { %474 = vmatpush2.msra.mxu0 %v294_v59  ;;  %3022 = vmatmul.mubr.msk.f32.gmra.mxu1 %vm318_vm0, %v251_v7  ;;  %v241_v59 = vld [vmem:[%s3516_s19 + $0x1e8] sm:$0xff]  ;;  %v274_v7 = vld [vmem:[%s3516_s19 + $0x2f0] sm:$0xff] }
  0x48   : > { %475 = vmatprep.subr.mxu0 %v3433_v1  ;;  %3024 = vmatprep.mubr.msk.f32.mxu1 %vm318_vm0, %v254_v9 }
  0x49   : > { %476 = vmatpush2.msra.mxu0 %v293_v62  ;;  %1262 = vrot.lane.b32.xlu1 %v243_v38, %s3434_s11  ;;  %v250_v62 = vld [vmem:[%s3516_s19 + $0x230] sm:$0xff] }
  0x4a   : > { %477 = vmatprep.subr.mxu0 %v3433_v1  ;;  %v187_v1 = vld [vmem:[%s3516_s19 + $0x38] sm:$0xff]  ;;  %1264 = vrot.lane.b32.xlu0 %v246_v39, %s3434_s11 }
  0x4b   : > { %478 = vmatpush2.msra.mxu0 %v292_v2  ;;  %3025 = vmatmul.mubr.msk.f32.gmra.mxu1 %vm318_vm0, %v257_v11  ;;  %v259_v2 = vld [vmem:[%s3516_s19 + $0x278] sm:$0xff] }
  0x4c   : > { %480 = vmatmul.mubr.f32.vlgmr.msra.gmra.mxu0 %v180_v54  ;;  %3027 = vmatprep.mubr.msk.f32.mxu1 %vm318_vm0, %v260_v13  ;;  %v226_v54 = vld [vmem:[%s3516_s19 + $0x170] sm:$0xff] }
  0x4d   : > { %484 = vmatprep.mubr.f32.mxu0 %v184_v5  ;;  %1266 = vrot.lane.b32.xlu1 %v249_v41, %s3434_s11  ;;  %v268_v5 = vld [vmem:[%s3516_s19 + $0x2c0] sm:$0xff] }
  0x4e   : > { %1268 = vrot.lane.b32.xlu0 %v252_v42, %s3434_s11 }
  0x4f   : > { %3028 = vmatmul.mubr.msk.f32.gmra.mxu1 %vm318_vm0, %v263_v16 }
  0x50   : > { %485 = vmatmul.mubr.f32.gmra.mxu0 %v183_v57  ;;  %3030 = vmatprep.mubr.msk.f32.mxu1 %vm318_vm0, %v266_v18  ;;  %v235_v57 = vld [vmem:[%s3516_s19 + $0x1b8] sm:$0xff] }
  0x51   : > { %489 = vmatprep.mubr.f32.mxu0 %v187_v1  ;;  %1270 = vrot.lane.b32.xlu1 %v255_v44, %s3434_s11 }
  0x52   : > { %1272 = vrot.lane.b32.xlu0 %v258_v45, %s3434_s11 }
  0x53   : > { %3031 = vmatmul.mubr.msk.f32.gmra.mxu1 %vm318_vm0, %v269_v21 }
  0x54   : > { %490 = vmatmul.mubr.f32.gmra.mxu0 %v186_v60  ;;  %3033 = vmatprep.mubr.msk.f32.mxu1 %vm318_vm0, %v272_v23  ;;  %v244_v60 = vld [vmem:[%s3516_s19 + $0x200] sm:$0xff] }
  0x55   : > { %494 = vmatprep.mubr.f32.mxu0 %v190_v14  ;;  %1274 = vrot.lane.b32.xlu1 %v261_v47, %s3434_s11 }
  0x56   : > { %1276 = vrot.lane.b32.xlu0 %v264_v48, %s3434_s11 }
  0x57   : > { %3034 = vmatmul.mubr.msk.f32.gmra.mxu1 %vm318_vm0, %v275_v26 }
  0x58   : > { %495 = vmatmul.mubr.f32.gmra.mxu0 %v189_v63  ;;  %v253_v63 = vld [vmem:[%s3516_s19 + $0x248] sm:$0xff] }
  0x59   : > { %499 = vmatprep.mubr.f32.mxu0 %v193_v19  ;;  %1278 = vrot.lane.b32.xlu1 %v267_v50, %s3434_s11 }
  0x5a   : > { %1280 = vrot.lane.b32.xlu0 %v270_v51, %s3434_s11 }
  0x5c   : > { %500 = vmatmul.mubr.f32.gmra.mxu0 %v192_v3  ;;  %v262_v3 = vld [vmem:[%s3516_s19 + $0x290] sm:$0xff] }
  0x5d   : > { %504 = vmatprep.mubr.f32.mxu0 %v196_v24  ;;  %1282 = vrot.lane.b32.xlu1 %v273_v53, %s3434_s11 }
  0x60   : > { %505 = vmatmul.mubr.f32.gmra.mxu0 %v195_v6  ;;  %v271_v6 = vld [vmem:[%s3516_s19 + $0x2d8] sm:$0xff] }
  0x61   : > { %509 = vmatprep.mubr.f32.mxu0 %v199_v28 }
  0x64   : > { %510 = vmatmul.mubr.f32.gmra.mxu0 %v198_v8  ;;  %v314_v8 = vlaneseq }
  0x65   : > { %514 = vmatprep.mubr.f32.mxu0 %v202_v31 }
  0x66   : > { %v3811_v9 = vshrl.u32 %v314_v8, 7 }
  0x68   : > { %515 = vmatmul.mubr.f32.gmra.mxu0 %v201_v10  ;;  %4984 = vst [vmem:[#allocation2_spill] sm:$0xff] %v3811_v9  ;;  %v316_v1 = vsub.s32 0, %v3811_v9  ;;  %v179_v10 = vld [vmem:[%s4972_s2 + $0x20] sm:$0xff] }
  0x69   : > { %519 = vmatprep.mubr.f32.mxu0 %v205_v34 }
  0x6c   : > { %520 = vmatmul.mubr.f32.gmra.mxu0 %v204_v12  ;;  %v3817_v12 = vrot.slane %v179_v10, %v316_v1 }
  0x6d   : > { %524 = vmatprep.mubr.f32.mxu0 %v208_v37 }
  0x70   : > { %525 = vmatmul.mubr.f32.gmra.mxu0 %v207_v15 }
  0x71   : > { %529 = vmatprep.mubr.f32.mxu0 %v211_v40 }
  0x74   : > { %530 = vmatmul.mubr.f32.gmra.mxu0 %v3697_v17 }
  0x75   : > { %534 = vmatprep.mubr.f32.mxu0 %v214_v43 }
  0x78   : > { %535 = vmatmul.mubr.f32.gmra.mxu0 %v3706_v20 }
  0x79   : > { %539 = vmatprep.mubr.f32.mxu0 %v217_v46 }
  0x7c   : > { %540 = vmatmul.mubr.f32.gmra.mxu0 %v3711_v22 }
  0x7d   : > { %544 = vmatprep.mubr.f32.mxu0 %v220_v49 }
  0x80   : > { %545 = vmatmul.mubr.f32.gmra.mxu0 %v3721_v25 }
  0x81   : > { %549 = vmatprep.mubr.f32.mxu0 %v223_v52 }
  0x84   : > { %550 = vmatmul.mubr.f32.gmra.mxu0 %v3726_v27 }
  0x85   : > { %554 = vmatprep.mubr.f32.mxu0 %v226_v54 }
  0x88   : > { %555 = vmatmul.mubr.f32.gmra.mxu0 %v3735_v29 }
  0x89   : > { %559 = vmatprep.mubr.f32.mxu0 %v229_v55 }
  0x8c   : > { %560 = vmatmul.mubr.f32.gmra.mxu0 %v3738_v30 }
  0x8d   : > { %564 = vmatprep.mubr.f32.mxu0 %v232_v56 }
  0x90   : > { %565 = vmatmul.mubr.f32.gmra.mxu0 %v231_v32 }
  0x91   : > { %569 = vmatprep.mubr.f32.mxu0 %v235_v57 }
  0x94   : > { %570 = vmatmul.mubr.f32.gmra.mxu0 %v3747_v33 }
  0x95   : > { %574 = vmatprep.mubr.f32.mxu0 %v238_v58 }
  0x98   : > { %575 = vmatmul.mubr.f32.gmra.mxu0 %v237_v35 }
  0x99   : > { %579 = vmatprep.mubr.f32.mxu0 %v241_v59 }
  0x9c   : > { %580 = vmatmul.mubr.f32.gmra.mxu0 %v240_v36 }
  0x9d   : > { %584 = vmatprep.mubr.f32.mxu0 %v244_v60 }
  0xa0   : > { %585 = vmatmul.mubr.f32.gmra.mxu0 %v243_v38 }
  0xa1   : > { %589 = vmatprep.mubr.f32.mxu0 %v247_v61 }
  0xa4   : > { %590 = vmatmul.mubr.f32.gmra.mxu0 %v246_v39 }
  0xa5   : > { %594 = vmatprep.mubr.f32.mxu0 %v250_v62 }
  0xa8   : > { %595 = vmatmul.mubr.f32.gmra.mxu0 %v249_v41 }
  0xa9   : > { %599 = vmatprep.mubr.f32.mxu0 %v253_v63 }
  0xac   : > { %600 = vmatmul.mubr.f32.gmra.mxu0 %v252_v42 }
  0xad   : > { %604 = vmatprep.mubr.f32.mxu0 %v256_v0 }
  0xb0   : > { %605 = vmatmul.mubr.f32.gmra.mxu0 %v255_v44 }
  0xb1   : > { %609 = vmatprep.mubr.f32.mxu0 %v259_v2 }
  0xb4   : > { %610 = vmatmul.mubr.f32.gmra.mxu0 %v258_v45 }
  0xb5   : > { %614 = vmatprep.mubr.f32.mxu0 %v262_v3 }
  0xb8   : > { %615 = vmatmul.mubr.f32.gmra.mxu0 %v261_v47 }
  0xb9   : > { %619 = vmatprep.mubr.f32.mxu0 %v265_v4 }
  0xbc   : > { %620 = vmatmul.mubr.f32.gmra.mxu0 %v264_v48 }
  0xbd   : > { %624 = vmatprep.mubr.f32.mxu0 %v268_v5 }
  0xc0   : > { %625 = vmatmul.mubr.f32.gmra.mxu0 %v267_v50 }
  0xc1   : > { %629 = vmatprep.mubr.f32.mxu0 %v271_v6 }
  0xc4   : > { %630 = vmatmul.mubr.f32.gmra.mxu0 %v270_v51 }
  0xc5   : > { %634 = vmatprep.mubr.f32.mxu0 %v274_v7 }
  0xc8   : > { %635 = vmatmul.mubr.f32.gmra.mxu0 %v273_v53 }
  0xdb   : > { %v2990_v11 = vpop.f32.mrf.mxu1 }
  0xdd   : > { %v706_v14 = vpop.f32.mrf.mxu1 }
  0xdf   : > { %v2993_v19 = vpop.f32.mrf.mxu1 }
  0xe1   : > { %v716_v25 = vpop.f32.mrf.mxu1 }
  0xe3   : > { %v2996_v31 = vpop.f32.mrf.mxu1 }
  0xe5   : > { %v726_v37 = vpop.f32.mrf.mxu1 }
  0xe7   : > { %v2999_v44 = vpop.f32.mrf.mxu1 }
  0xe9   : > { %v736_v52 = vpop.f32.mrf.mxu1 }
  0xeb   : > { %v3002_v60 = vpop.f32.mrf.mxu1 }
  0xed   : > { %v746_v5 = vpop.f32.mrf.mxu1 }
 0x10c   : > { %v481_v13 = vpop.f32.mrf.mxu0 }
 0x10d   : > { %v482_v15 = vadd.f32 %v481_v13, %v3817_v12 }
 0x10e   : > { %v483_v16 = vpop.f32.mrf.mxu0 }
 0x10f   : > { %v707_v17 = vadd.f32 %v706_v14, %v482_v15  ;;  %v3005_v16 = vpop.f32.mrf.mxu1 }
 0x110   : > { %v486_v18 = vpop.f32.mrf.mxu0 }
 0x111   : > { %v2803_v20 = vmul.f32 -1.442695, %v707_v17  ;;  %v487_v21 = vadd.f32 %v486_v18, %v3817_v12 }
 0x112   : > { %v488_v22 = vpop.f32.mrf.mxu0 }
 0x113   : > { %3104 = vpow2.f32 %v2803_v20  ;;  %v712_v23 = vadd.f32 %v2990_v11, %v487_v21  ;;  %v3829_v11 = vand.u32 127, %v314_v8 }
 0x114   : > { %v491_v24 = vpop.f32.mrf.mxu0 }
 0x115   : > { %v2804_v26 = vmul.f32 -1.442695, %v712_v23  ;;  %v492_v27 = vadd.f32 %v491_v24, %v3817_v12  ;;  %vm1059_vm1 = vcmp.lt.s32.totalorder %v3829_v11, 96 }
 0x116   : > { %v493_v28 = vpop.f32.mrf.mxu0 }
 0x117   : > { %3106 = vpow2.f32 %v2804_v26  ;;  %v717_v29 = vadd.f32 %v716_v25, %v492_v27  ;;  %v756_v26 = vpop.f32.mrf.mxu1 }
 0x118   : > { %v496_v30 = vpop.f32.mrf.mxu0 }
 0x119   : > { %v2805_v32 = vmul.f32 -1.442695, %v717_v29  ;;  %v497_v33 = vadd.f32 %v496_v30, %v3817_v12 }
 0x11a   : > { %v498_v34 = vpop.f32.mrf.mxu0 }
 0x11b   : > { %3108 = vpow2.f32 %v2805_v32  ;;  %v722_v35 = vadd.f32 %v2993_v19, %v497_v33 }
 0x11c   : > { %v501_v36 = vpop.f32.mrf.mxu0 }
 0x11d   : > { %v2806_v38 = vmul.f32 -1.442695, %v722_v35  ;;  %v502_v39 = vadd.f32 %v501_v36, %v3817_v12 }
 0x11e   : > { %v503_v40 = vpop.f32.mrf.mxu0 }
 0x11f   : > { %3110 = vpow2.f32 %v2806_v38  ;;  %v727_v41 = vadd.f32 %v726_v37, %v502_v39  ;;  %v3008_v38 = vpop.f32.mrf.mxu1 }
 0x120   : > { %v3105_v42 = vpop.eup %3104  ;;  %v506_v43 = vpop.f32.mrf.mxu0 }
 0x121   : > { %v961_v45 = vadd.f32 1.0, %v3105_v42  ;;  %v2807_v46 = vmul.f32 -1.442695, %v727_v41  ;;  %v507_v47 = vadd.f32 %v506_v43, %v3817_v12 }
 0x122   : > { %v508_v48 = vpop.f32.mrf.mxu0 }
 0x123   : > { %3112 = vrcp.f32 %v961_v45  ;;  %v732_v49 = vadd.f32 %v2996_v31, %v507_v47 }
 0x124   : > { %v3107_v50 = vpop.eup %3106  ;;  %3114 = vpow2.f32 %v2807_v46  ;;  %v511_v51 = vpop.f32.mrf.mxu0 }
 0x125   : > { %v962_v53 = vadd.f32 1.0, %v3107_v50  ;;  %v2808_v54 = vmul.f32 -1.442695, %v732_v49  ;;  %v512_v55 = vadd.f32 %v511_v51, %v3817_v12  ;;  %v766_v50 = vpop.f32.mrf.mxu1 }
 0x126   : > { %v513_v56 = vpop.f32.mrf.mxu0 }
 0x127   : > { %3116 = vrcp.f32 %v962_v53  ;;  %v737_v57 = vadd.f32 %v736_v52, %v512_v55 }
 0x128   : > { %v3109_v58 = vpop.eup %3108  ;;  %3118 = vpow2.f32 %v2808_v54  ;;  %v516_v59 = vpop.f32.mrf.mxu0 }
 0x129   : > { %v963_v61 = vadd.f32 1.0, %v3109_v58  ;;  %v2809_v62 = vmul.f32 -1.442695, %v737_v57  ;;  %v517_v63 = vadd.f32 %v516_v59, %v3817_v12 }
 0x12a   : > { %v518_v0 = vpop.f32.mrf.mxu0 }
 0x12b   : > { %3120 = vrcp.f32 %v963_v61  ;;  %v742_v2 = vadd.f32 %v2999_v44, %v517_v63 }
 0x12c   : > { %v3111_v3 = vpop.eup %3110  ;;  %3122 = vpow2.f32 %v2809_v62  ;;  %v521_v4 = vpop.f32.mrf.mxu0 }
 0x12d   : > { %v964_v6 = vadd.f32 1.0, %v3111_v3  ;;  %v2810_v7 = vmul.f32 -1.442695, %v742_v2  ;;  %v522_v1 = vadd.f32 %v521_v4, %v3817_v12  ;;  %v3011_v62 = vpop.f32.mrf.mxu1 }
 0x12e   : > { %v523_v10 = vpop.f32.mrf.mxu0 }
 0x12f   : > { %3124 = vrcp.f32 %v964_v6  ;;  %v747_v13 = vadd.f32 %v746_v5, %v522_v1 }
 0x130   : > { %v3113_v14 = vpop.eup %3112  ;;  %3126 = vpow2.f32 %v2810_v7  ;;  %v526_v15 = vpop.f32.mrf.mxu0 }
 0x131   : > { %v3115_v17 = vpop.eup %3114  ;;  %v2811_v18 = vmul.f32 -1.442695, %v747_v13  ;;  %v527_v19 = vadd.f32 %v526_v15, %v3817_v12  ;;  %v1060_v20 = vmul.f32 2.0, %v3113_v14 }
 0x132   : > { %v965_v21 = vadd.f32 1.0, %v3115_v17  ;;  %v528_v22 = vpop.f32.mrf.mxu0 }
 0x133   : > { %3128 = vpow2.f32 %v2811_v18  ;;  %v752_v23 = vadd.f32 %v3002_v60, %v527_v19  ;;  %v2835_v24 = vadd.f32 -1.0, %v1060_v20 }
 0x134   : > { %v3117_v8 = vpop.eup %3116  ;;  %3130 = vrcp.f32 %v965_v21  ;;  %v531_v25 = vpop.f32.mrf.mxu0 }
 0x135   : > { %v3119_v27 = vpop.eup %3118  ;;  %v2812_v28 = vmul.f32 -1.442695, %v752_v23  ;;  %v532_v29 = vadd.f32 %v531_v25, %v3817_v12  ;;  %v3836_v30 = vsel %vm1059_vm1, %v3113_v14, %v2835_v24  ;;  %v1061_v31 = vmul.f32 2.0, %v3117_v8  ;;  %v776_v14 = vpop.f32.mrf.mxu1 }
 0x136   : > { %v966_v32 = vadd.f32 1.0, %v3119_v27  ;;  %v533_v33 = vpop.f32.mrf.mxu0  ;;  %1380 = vrot.lane.b32.xlu0 %v3836_v30, %s3434_s11 }
 0x137   : > { %3132 = vpow2.f32 %v2812_v28  ;;  %v757_v34 = vadd.f32 %v756_v26, %v532_v29  ;;  %v2836_v35 = vadd.f32 -1.0, %v1061_v31  ;;  %v3014_v25 = vpop.f32.mrf.mxu1 }
 0x138   : > { %v3121_v36 = vpop.eup %3120  ;;  %3134 = vrcp.f32 %v966_v32  ;;  %v536_v37 = vpop.f32.mrf.mxu0 }
 0x139   : > { %v3123_v39 = vpop.eup %3122  ;;  %v2813_v40 = vmul.f32 -1.442695, %v757_v34  ;;  %v537_v41 = vadd.f32 %v536_v37, %v3817_v12  ;;  %v3843_v42 = vsel %vm1059_vm1, %v3117_v8, %v2836_v35  ;;  %v1062_v43 = vmul.f32 2.0, %v3121_v36 }
 0x13a   : > { %v967_v44 = vadd.f32 1.0, %v3123_v39  ;;  %v538_v45 = vpop.f32.mrf.mxu0  ;;  %1382 = vrot.lane.b32.xlu0 %v3843_v42, %s3434_s11 }
 0x13b   : > { %3136 = vpow2.f32 %v2813_v40  ;;  %v762_v46 = vadd.f32 %v3005_v16, %v537_v41  ;;  %v2837_v47 = vadd.f32 -1.0, %v1062_v43 }
 0x13c   : > { %v3125_v48 = vpop.eup %3124  ;;  %3138 = vrcp.f32 %v967_v44  ;;  %v541_v49 = vpop.f32.mrf.mxu0 }
 0x13d   : > { %v3127_v51 = vpop.eup %3126  ;;  %v2814_v52 = vmul.f32 -1.442695, %v762_v46  ;;  %v542_v53 = vadd.f32 %v541_v49, %v3817_v12  ;;  %v3850_v54 = vsel %vm1059_vm1, %v3121_v36, %v2837_v47  ;;  %v1063_v55 = vmul.f32 2.0, %v3125_v48 }
 0x13e   : > { %v968_v56 = vadd.f32 1.0, %v3127_v51  ;;  %v543_v57 = vpop.f32.mrf.mxu0  ;;  %1384 = vrot.lane.b32.xlu1 %v3850_v54, %s3434_s11 }
 0x13f   : > { %3140 = vpow2.f32 %v2814_v52  ;;  %v767_v58 = vadd.f32 %v766_v50, %v542_v53  ;;  %v2838_v59 = vadd.f32 -1.0, %v1063_v55 }
 0x140   : > { %v3129_v60 = vpop.eup %3128  ;;  %3142 = vrcp.f32 %v968_v56  ;;  %v546_v61 = vpop.f32.mrf.mxu0 }
 0x141   : > { %v3131_v63 = vpop.eup %3130  ;;  %v969_v0 = vadd.f32 1.0, %v3129_v60  ;;  %v2815_v2 = vmul.f32 -1.442695, %v767_v58  ;;  %v547_v3 = vadd.f32 %v546_v61, %v3817_v12  ;;  %v3857_v4 = vsel %vm1059_vm1, %v3125_v48, %v2838_v59 }
 0x142   : > { %v548_v5 = vpop.f32.mrf.mxu0  ;;  %1386 = vrot.lane.b32.xlu1 %v3857_v4, %s3434_s11  ;;  %v1064_v6 = vmul.f32 2.0, %v3131_v63 }
 0x143   : > { %3144 = vrcp.f32 %v969_v0  ;;  %v772_v7 = vadd.f32 %v3008_v38, %v547_v3  ;;  %v786_v38 = vpop.f32.mrf.mxu1 }
 0x144   : > { %v3133_v1 = vpop.eup %3132  ;;  %3146 = vpow2.f32 %v2815_v2  ;;  %v551_v10 = vpop.f32.mrf.mxu0  ;;  %v2839_v13 = vadd.f32 -1.0, %v1064_v6 }
 0x145   : > { %v3135_v15 = vpop.eup %3134  ;;  %v970_v16 = vadd.f32 1.0, %v3133_v1  ;;  %v2816_v17 = vmul.f32 -1.442695, %v772_v7  ;;  %v552_v18 = vadd.f32 %v551_v10, %v3817_v12  ;;  %v3017_v51 = vpop.f32.mrf.mxu1 }
 0x146   : > { %v3864_v19 = vsel %vm1059_vm1, %v3131_v63, %v2839_v13  ;;  %v553_v20 = vpop.f32.mrf.mxu0  ;;  %v1065_v21 = vmul.f32 2.0, %v3135_v15 }
 0x147   : > { %3148 = vrcp.f32 %v970_v16  ;;  %v777_v22 = vadd.f32 %v776_v14, %v552_v18  ;;  %1388 = vrot.lane.b32.xlu0 %v3864_v19, %s3434_s11  ;;  %v796_v0 = vpop.f32.mrf.mxu1 }
 0x148   : > { %v3137_v23 = vpop.eup %3136  ;;  %3150 = vpow2.f32 %v2816_v17  ;;  %v556_v24 = vpop.f32.mrf.mxu0  ;;  %v2840_v8 = vadd.f32 -1.0, %v1065_v21 }
 0x149   : > { %v3139_v26 = vpop.eup %3138  ;;  %v971_v27 = vadd.f32 1.0, %v3137_v23  ;;  %v2817_v28 = vmul.f32 -1.442695, %v777_v22  ;;  %v557_v29 = vadd.f32 %v556_v24, %v3817_v12  ;;  %v3020_v17 = vpop.f32.mrf.mxu1 }
 0x14a   : > { %v3871_v31 = vsel %vm1059_vm1, %v3135_v15, %v2840_v8  ;;  %v558_v32 = vpop.f32.mrf.mxu0  ;;  %v1066_v33 = vmul.f32 2.0, %v3139_v26 }
 0x14b   : > { %3152 = vrcp.f32 %v971_v27  ;;  %v782_v34 = vadd.f32 %v3011_v62, %v557_v29  ;;  %1390 = vrot.lane.b32.xlu1 %v3871_v31, %s3434_s11  ;;  %v806_v29 = vpop.f32.mrf.mxu1 }
 0x14c   : > { %v3141_v35 = vpop.eup %3140  ;;  %3154 = vpow2.f32 %v2817_v28  ;;  %v561_v36 = vpop.f32.mrf.mxu0  ;;  %v2841_v37 = vadd.f32 -1.0, %v1066_v33 }
 0x14d   : > { %v3143_v39 = vpop.eup %3142  ;;  %v972_v40 = vadd.f32 1.0, %v3141_v35  ;;  %v2818_v41 = vmul.f32 -1.442695, %v782_v34  ;;  %v562_v43 = vadd.f32 %v561_v36, %v3817_v12 }
 0x14e   : > { %v3878_v44 = vsel %vm1059_vm1, %v3139_v26, %v2841_v37  ;;  %v563_v45 = vpop.f32.mrf.mxu0  ;;  %v1067_v46 = vmul.f32 2.0, %v3143_v39 }
 0x14f   : > { %3156 = vrcp.f32 %v972_v40  ;;  %v787_v47 = vadd.f32 %v786_v38, %v562_v43  ;;  %1392 = vrot.lane.b32.xlu0 %v3878_v44, %s3434_s11  ;;  %v3023_v45 = vpop.f32.mrf.mxu1 }
 0x150   : > { %v3145_v48 = vpop.eup %3144  ;;  %3158 = vpow2.f32 %v2818_v41  ;;  %v566_v49 = vpop.f32.mrf.mxu0  ;;  %v2842_v50 = vadd.f32 -1.0, %v1067_v46 }
 0x151   : > { %v3147_v52 = vpop.eup %3146  ;;  %v2819_v53 = vmul.f32 -1.442695, %v787_v47  ;;  %v567_v55 = vadd.f32 %v566_v49, %v3817_v12  ;;  %v1068_v56 = vmul.f32 2.0, %v3145_v48  ;;  %v3910_v47 = vpop.permute.xlu0 %1220 }
 0x152   : > { %v973_v57 = vadd.f32 1.0, %v3147_v52  ;;  %v3885_v58 = vsel %vm1059_vm1, %v3143_v39, %v2842_v50  ;;  %v568_v59 = vpop.f32.mrf.mxu0 }
 0x153   : > { %3160 = vpow2.f32 %v2819_v53  ;;  %v792_v60 = vadd.f32 %v3014_v25, %v567_v55  ;;  %1394 = vrot.lane.b32.xlu1 %v3885_v58, %s3434_s11  ;;  %v2843_v61 = vadd.f32 -1.0, %v1068_v56 }
 0x154   : > { %v3149_v62 = vpop.eup %3148  ;;  %3162 = vrcp.f32 %v973_v57  ;;  %v571_v63 = vpop.f32.mrf.mxu0 }
 0x155   : > { %v3151_v2 = vpop.eup %3150  ;;  %v2820_v3 = vmul.f32 -1.442695, %v792_v60  ;;  %v572_v5 = vadd.f32 %v571_v63, %v3817_v12  ;;  %v3892_v6 = vsel %vm1059_vm1, %v3145_v48, %v2843_v61  ;;  %v1069_v7 = vmul.f32 2.0, %v3149_v62  ;;  %v816_v60 = vpop.f32.mrf.mxu1 }
 0x156   : > { %v974_v1 = vadd.f32 1.0, %v3151_v2  ;;  %v573_v10 = vpop.f32.mrf.mxu0  ;;  %1396 = vrot.lane.b32.xlu0 %v3892_v6, %s3434_s11 }
 0x157   : > { %3164 = vpow2.f32 %v2820_v3  ;;  %v797_v13 = vadd.f32 %v796_v0, %v572_v5  ;;  %v2844_v14 = vadd.f32 -1.0, %v1069_v7 }
 0x158   : > { %v3153_v15 = vpop.eup %3152  ;;  %3166 = vrcp.f32 %v974_v1  ;;  %v576_v16 = vpop.f32.mrf.mxu0 }
 0x159   : > { %v3155_v18 = vpop.eup %3154  ;;  %v2821_v20 = vmul.f32 -1.442695, %v797_v13  ;;  %v577_v21 = vadd.f32 %v576_v16, %v3817_v12  ;;  %v3899_v22 = vsel %vm1059_vm1, %v3149_v62, %v2844_v14  ;;  %v1070_v23 = vmul.f32 2.0, %v3153_v15  ;;  %v3919_v62 = vpop.permute.xlu0 %1224 }
 0x15a   : > { %v975_v24 = vadd.f32 1.0, %v3155_v18  ;;  %v578_v8 = vpop.f32.mrf.mxu0  ;;  %1398 = vrot.lane.b32.xlu1 %v3899_v22, %s3434_s11 }
 0x15b   : > { %3168 = vpow2.f32 %v2821_v20  ;;  %v802_v25 = vadd.f32 %v3017_v51, %v577_v21  ;;  %v2845_v26 = vadd.f32 -1.0, %v1070_v23 }
 0x15c   : > { %v3157_v27 = vpop.eup %3156  ;;  %3170 = vrcp.f32 %v975_v24  ;;  %v581_v28 = vpop.f32.mrf.mxu0 }
 0x15d   : > { %v3159_v32 = vpop.eup %3158  ;;  %v2822_v33 = vmul.f32 -1.442695, %v802_v25  ;;  %v582_v34 = vadd.f32 %v581_v28, %v3817_v12  ;;  %v3906_v35 = vsel %vm1059_vm1, %v3153_v15, %v2845_v26  ;;  %v1071_v36 = vmul.f32 2.0, %v3157_v27  ;;  %v3026_v15 = vpop.f32.mrf.mxu1 }
 0x15e   : > { %v976_v37 = vadd.f32 1.0, %v3159_v32  ;;  %v583_v38 = vpop.f32.mrf.mxu0  ;;  %1400 = vrot.lane.b32.xlu0 %v3906_v35, %s3434_s11  ;;  %v3935_v25 = vpop.permute.xlu1 %1222 }
 0x15f   : > { %3172 = vpow2.f32 %v2822_v33  ;;  %v807_v39 = vadd.f32 %v806_v29, %v582_v34  ;;  %v2846_v40 = vadd.f32 -1.0, %v1071_v36  ;;  %v826_v32 = vpop.f32.mrf.mxu1 }
 0x160   : > { %v3161_v41 = vpop.eup %3160  ;;  %3174 = vrcp.f32 %v976_v37  ;;  %v586_v43 = vpop.f32.mrf.mxu0 }
 0x161   : > { %v3163_v46 = vpop.eup %3162  ;;  %v977_v48 = vadd.f32 1.0, %v3161_v41  ;;  %v2823_v49 = vmul.f32 -1.442695, %v807_v39  ;;  %v587_v50 = vadd.f32 %v586_v43, %v3817_v12  ;;  %v3915_v51 = vsel %vm1059_vm1, %v3157_v27, %v2846_v40 }
 0x162   : > { %v588_v52 = vpop.f32.mrf.mxu0  ;;  %1402 = vrot.lane.b32.xlu1 %v3915_v51, %s3434_s11  ;;  %v1072_v53 = vmul.f32 2.0, %v3163_v46  ;;  %v3946_v43 = vpop.permute.xlu1 %1226 }
 0x163   : > { %3176 = vrcp.f32 %v977_v48  ;;  %v812_v55 = vadd.f32 %v3020_v17, %v587_v50  ;;  %v3928_v17 = vpop.permute.xlu0 %1228  ;;  %v3029_v50 = vpop.f32.mrf.mxu1 }
 0x164   : > { %v3165_v56 = vpop.eup %3164  ;;  %3178 = vpow2.f32 %v2823_v49  ;;  %v591_v57 = vpop.f32.mrf.mxu0  ;;  %v2847_v59 = vadd.f32 -1.0, %v1072_v53 }
 0x165   : > { %v3167_v61 = vpop.eup %3166  ;;  %v978_v63 = vadd.f32 1.0, %v3165_v56  ;;  %v2824_v0 = vmul.f32 -1.442695, %v812_v55  ;;  %v592_v2 = vadd.f32 %v591_v57, %v3817_v12 }
 0x166   : > { %v3924_v3 = vsel %vm1059_vm1, %v3163_v46, %v2847_v59  ;;  %v593_v5 = vpop.f32.mrf.mxu0  ;;  %v1073_v7 = vmul.f32 2.0, %v3167_v61 }
 0x167   : > { %3180 = vrcp.f32 %v978_v63  ;;  %v817_v1 = vadd.f32 %v816_v60, %v592_v2  ;;  %1404 = vrot.lane.b32.xlu0 %v3924_v3, %s3434_s11  ;;  %v3939_v34 = vpop.permute.xlu0 %1232  ;;  %v3957_v63 = vpop.permute.xlu1 %1230 }
 0x168   : > { %v3169_v10 = vpop.eup %3168  ;;  %3182 = vpow2.f32 %v2824_v0  ;;  %v596_v13 = vpop.f32.mrf.mxu0  ;;  %v2848_v14 = vadd.f32 -1.0, %v1073_v7 }
 0x169   : > { %v3171_v16 = vpop.eup %3170  ;;  %v979_v18 = vadd.f32 1.0, %v3169_v10  ;;  %v2825_v20 = vmul.f32 -1.442695, %v817_v1  ;;  %v597_v21 = vadd.f32 %v596_v13, %v3817_v12  ;;  %v836_v1 = vpop.f32.mrf.mxu1 }
 0x16a   : > { %v3933_v23 = vsel %vm1059_vm1, %v3167_v61, %v2848_v14  ;;  %v598_v24 = vpop.f32.mrf.mxu0  ;;  %v1074_v8 = vmul.f32 2.0, %v3171_v16 }
 0x16b   : > { %3184 = vrcp.f32 %v979_v18  ;;  %v822_v26 = vadd.f32 %v3023_v45, %v597_v21  ;;  %1406 = vrot.lane.b32.xlu1 %v3933_v23, %s3434_s11  ;;  %v3950_v53 = vpop.permute.xlu0 %1236  ;;  %v3970_v24 = vpop.permute.xlu1 %1234 }
 0x16c   : > { %v3173_v27 = vpop.eup %3172  ;;  %3186 = vpow2.f32 %v2825_v20  ;;  %v601_v28 = vpop.f32.mrf.mxu0  ;;  %v2849_v29 = vadd.f32 -1.0, %v1074_v8 }
 0x16d   : > { %v3175_v33 = vpop.eup %3174  ;;  %v980_v36 = vadd.f32 1.0, %v3173_v27  ;;  %v2826_v37 = vmul.f32 -1.442695, %v822_v26  ;;  %v602_v38 = vadd.f32 %v601_v28, %v3817_v12 }
 0x16e   : > { %v3944_v39 = vsel %vm1059_vm1, %v3171_v16, %v2849_v29  ;;  %v603_v40 = vpop.f32.mrf.mxu0  ;;  %v1075_v41 = vmul.f32 2.0, %v3175_v33  ;;  %v3032_v29 = vpop.f32.mrf.mxu1 }
 0x16f   : > { %3188 = vrcp.f32 %v980_v36  ;;  %v827_v45 = vadd.f32 %v826_v32, %v602_v38  ;;  %1408 = vrot.lane.b32.xlu0 %v3944_v39, %s3434_s11  ;;  %v3961_v13 = vpop.permute.xlu0 %1240 }
 0x170   : > { %v3177_v46 = vpop.eup %3176  ;;  %3190 = vpow2.f32 %v2826_v37  ;;  %v606_v48 = vpop.f32.mrf.mxu0  ;;  %v2850_v49 = vadd.f32 -1.0, %v1075_v41 }
 0x171   : > { %v3179_v52 = vpop.eup %3178  ;;  %v2827_v55 = vmul.f32 -1.442695, %v827_v45  ;;  %v607_v56 = vadd.f32 %v606_v48, %v3817_v12  ;;  %v1076_v57 = vmul.f32 2.0, %v3177_v46 }
 0x172   : > { %v981_v59 = vadd.f32 1.0, %v3179_v52  ;;  %v3955_v60 = vsel %vm1059_vm1, %v3175_v33, %v2850_v49  ;;  %v608_v61 = vpop.f32.mrf.mxu0 }
 0x173   : > { %3192 = vpow2.f32 %v2827_v55  ;;  %v832_v0 = vadd.f32 %v3026_v15, %v607_v56  ;;  %1410 = vrot.lane.b32.xlu1 %v3955_v60, %s3434_s11  ;;  %v2851_v2 = vadd.f32 -1.0, %v1076_v57  ;;  %v3972_v33 = vpop.permute.xlu0 %1244  ;;  %v846_v56 = vpop.f32.mrf.mxu1 }
 0x174   : > { %v3181_v5 = vpop.eup %3180  ;;  %3194 = vrcp.f32 %v981_v59  ;;  %v611_v7 = vpop.f32.mrf.mxu0 }
 0x175   : > { %v3183_v10 = vpop.eup %3182  ;;  %v2828_v14 = vmul.f32 -1.442695, %v832_v0  ;;  %v612_v16 = vadd.f32 %v611_v7, %v3817_v12  ;;  %v3966_v18 = vsel %vm1059_vm1, %v3177_v46, %v2851_v2  ;;  %v1077_v20 = vmul.f32 2.0, %v3181_v5  ;;  %v3981_v46 = vpop.permute.xlu1 %1238 }
 0x176   : > { %v982_v15 = vadd.f32 1.0, %v3183_v10  ;;  %v613_v21 = vpop.f32.mrf.mxu0  ;;  %1412 = vrot.lane.b32.xlu0 %v3966_v18, %s3434_s11 }
 0x177   : > { %3196 = vpow2.f32 %v2828_v14  ;;  %v837_v8 = vadd.f32 %v836_v1, %v612_v16  ;;  %v2852_v26 = vadd.f32 -1.0, %v1077_v20  ;;  %v3983_v59 = vpop.permute.xlu0 %1248 }
 0x178   : > { %v3185_v27 = vpop.eup %3184  ;;  %3198 = vrcp.f32 %v982_v15  ;;  %v616_v28 = vpop.f32.mrf.mxu0 }
 0x179   : > { %v3187_v32 = vpop.eup %3186  ;;  %v2829_v36 = vmul.f32 -1.442695, %v837_v8  ;;  %v617_v37 = vadd.f32 %v616_v28, %v3817_v12  ;;  %v3977_v38 = vsel %vm1059_vm1, %v3181_v5, %v2852_v26  ;;  %v1078_v40 = vmul.f32 2.0, %v3185_v27  ;;  %v3992_v16 = vpop.permute.xlu1 %1242 }
 0x17a   : > { %v983_v41 = vadd.f32 1.0, %v3187_v32  ;;  %v618_v45 = vpop.f32.mrf.mxu0  ;;  %1414 = vrot.lane.b32.xlu1 %v3977_v38, %s3434_s11 }
 0x17b   : > { %3200 = vpow2.f32 %v2829_v36  ;;  %v842_v48 = vadd.f32 %v3029_v50, %v617_v37  ;;  %v2853_v49 = vadd.f32 -1.0, %v1078_v40  ;;  %v3994_v8 = vpop.permute.xlu0 %1252  ;;  %v3035_v36 = vpop.f32.mrf.mxu1 }
 0x17c   : > { %v3189_v52 = vpop.eup %3188  ;;  %3202 = vrcp.f32 %v983_v41  ;;  %v621_v55 = vpop.f32.mrf.mxu0 }
 0x17d   : > { %v3191_v57 = vpop.eup %3190  ;;  %v2830_v61 = vmul.f32 -1.442695, %v842_v48  ;;  %v622_v0 = vadd.f32 %v621_v55, %v3817_v12  ;;  %v3988_v2 = vsel %vm1059_vm1, %v3185_v27, %v2853_v49  ;;  %v1079_v5 = vmul.f32 2.0, %v3189_v52  ;;  %v4003_v45 = vpop.permute.xlu1 %1246 }
 0x17e   : > { %v984_v7 = vadd.f32 1.0, %v3191_v57  ;;  %v623_v1 = vpop.f32.mrf.mxu0  ;;  %1416 = vrot.lane.b32.xlu0 %v3988_v2, %s3434_s11 }
 0x17f   : > { %3204 = vpow2.f32 %v2830_v61  ;;  %v847_v50 = vadd.f32 %v846_v56, %v622_v0  ;;  %v2854_v10 = vadd.f32 -1.0, %v1079_v5  ;;  %v4005_v57 = vpop.permute.xlu0 %1256  ;;  %v856_v0 = vpop.f32.mrf.mxu1 }
 0x180   : > { %v3193_v14 = vpop.eup %3192  ;;  %3206 = vrcp.f32 %v984_v7  ;;  %v626_v20 = vpop.f32.mrf.mxu0 }
 0x181   : > { %v3195_v15 = vpop.eup %3194  ;;  %v985_v21 = vadd.f32 1.0, %v3193_v14  ;;  %v2831_v26 = vmul.f32 -1.442695, %v847_v50  ;;  %v627_v27 = vadd.f32 %v626_v20, %v3817_v12  ;;  %v3999_v28 = vsel %vm1059_vm1, %v3189_v52, %v2854_v10  ;;  %v4014_v10 = vpop.permute.xlu1 %1250 }
 0x182   : > { %v628_v32 = vpop.f32.mrf.mxu0  ;;  %1418 = vrot.lane.b32.xlu1 %v3999_v28, %s3434_s11  ;;  %v1080_v37 = vmul.f32 2.0, %v3195_v15 }
 0x183   : > { %3208 = vrcp.f32 %v985_v21  ;;  %v852_v40 = vadd.f32 %v3032_v29, %v627_v27 }
 0x184   : > { %v3197_v41 = vpop.eup %3196  ;;  %3210 = vpow2.f32 %v2831_v26  ;;  %v631_v48 = vpop.f32.mrf.mxu0  ;;  %v2855_v49 = vadd.f32 -1.0, %v1080_v37 }
 0x185   : > { %v3199_v55 = vpop.eup %3198  ;;  %v986_v56 = vadd.f32 1.0, %v3197_v41  ;;  %v2832_v52 = vmul.f32 -1.442695, %v852_v40  ;;  %v632_v61 = vadd.f32 %v631_v48, %v3817_v12 }
 0x186   : > { %v4010_v5 = vsel %vm1059_vm1, %v3195_v15, %v2855_v49  ;;  %v633_v7 = vpop.f32.mrf.mxu0  ;;  %v1081_v29 = vmul.f32 2.0, %v3199_v55  ;;  %v4017_v15 = vpop.permute.xlu0 %1260 }
 0x187   : > { %3212 = vrcp.f32 %v986_v56  ;;  %v857_v1 = vadd.f32 %v856_v0, %v632_v61  ;;  %1420 = vrot.lane.b32.xlu0 %v4010_v5, %s3434_s11  ;;  %v4025_v56 = vpop.permute.xlu1 %1254 }
 0x188   : > { %v3201_v50 = vpop.eup %3200  ;;  %3214 = vpow2.f32 %v2832_v52  ;;  %v636_v14 = vpop.f32.mrf.mxu0  ;;  %v2856_v20 = vadd.f32 -1.0, %v1081_v29 }
 0x189   : > { %v3203_v21 = vpop.eup %3202  ;;  %v987_v26 = vadd.f32 1.0, %v3201_v50  ;;  %v2833_v27 = vmul.f32 -1.442695, %v857_v1  ;;  %v637_v32 = vadd.f32 %v636_v14, %v3817_v12 }
 0x18a   : > { %v4021_v37 = vsel %vm1059_vm1, %v3199_v55, %v2856_v20  ;;  %v638_v40 = vpop.f32.mrf.mxu0  ;;  %v1082_v41 = vmul.f32 2.0, %v3203_v21  ;;  %v4027_v7 = vpop.permute.xlu0 %1264 }
 0x18b   : > { %3216 = vrcp.f32 %v987_v26  ;;  %v862_v48 = vadd.f32 %v3035_v36, %v637_v32  ;;  %1422 = vrot.lane.b32.xlu1 %v4021_v37, %s3434_s11  ;;  %4985 = vst [vmem:[#allocation3_spill] sm:$0xff] %v4027_v7  ;;  %v4035_v1 = vpop.permute.xlu1 %1258 }
 0x18c   : > { %v3205_v49 = vpop.eup %3204  ;;  %3218 = vpow2.f32 %v2833_v27  ;;  %v2857_v52 = vadd.f32 -1.0, %v1082_v41 }
 0x18d   : > { %v3207_v61 = vpop.eup %3206  ;;  %v988_v12 = vadd.f32 1.0, %v3205_v49  ;;  %v2834_v0 = vmul.f32 -1.442695, %v862_v48 }
 0x18e   : > { %v4031_v55 = vsel %vm1059_vm1, %v3203_v21, %v2857_v52  ;;  %v1083_v29 = vmul.f32 2.0, %v3207_v61  ;;  %v4041_v32 = vpop.permute.xlu0 %1268 }
 0x18f   : > { %3220 = vrcp.f32 %v988_v12  ;;  %1424 = vrot.lane.b32.xlu0 %v4031_v55, %s3434_s11  ;;  %4986 = vst [vmem:[#allocation4_spill] sm:$0xff] %v4041_v32  ;;  %v4045_v41 = vpop.permute.xlu1 %1262 }
 0x190   : > { %v3209_v36 = vpop.eup %3208  ;;  %3222 = vpow2.f32 %v2834_v0  ;;  %v2858_v50 = vadd.f32 -1.0, %v1083_v29  ;;  %4987 = vst [vmem:[#allocation5_spill] sm:$0xff] %v4045_v41 }
 0x191   : > { %v3211_v14 = vpop.eup %3210  ;;  %v1084_v20 = vmul.f32 2.0, %v3209_v36 }
 0x192   : > { %v989_v26 = vadd.f32 1.0, %v3211_v14  ;;  %v4039_v27 = vsel %vm1059_vm1, %v3207_v61, %v2858_v50  ;;  %v4053_v61 = vpop.permute.xlu0 %1272 }
 0x193   : > { %1426 = vrot.lane.b32.xlu1 %v4039_v27, %s3434_s11  ;;  %v2859_v21 = vadd.f32 -1.0, %v1084_v20  ;;  %4988 = vst [vmem:[#allocation6_spill] sm:$0xff] %v4053_v61  ;;  %v4055_v50 = vpop.permute.xlu1 %1266 }
 0x194   : > { %v3213_v40 = vpop.eup %3212  ;;  %3224 = vrcp.f32 %v989_v26  ;;  %4989 = vst [vmem:[#allocation7_spill] sm:$0xff] %v4055_v50 }
 0x195   : > { %v3215_v48 = vpop.eup %3214  ;;  %v4049_v49 = vsel %vm1059_vm1, %v3209_v36, %v2859_v21  ;;  %v1085_v52 = vmul.f32 2.0, %v3213_v40 }
 0x196   : > { %v990_v12 = vadd.f32 1.0, %v3215_v48  ;;  %1428 = vrot.lane.b32.xlu0 %v4049_v49, %s3434_s11 }
 0x197   : > { %v2860_v0 = vadd.f32 -1.0, %v1085_v52  ;;  %v4063_v9 = vpop.permute.xlu1 %1270  ;;  %v4065_v52 = vpop.permute.xlu0 %1276 }
 0x198   : > { %v3217_v29 = vpop.eup %3216  ;;  %3226 = vrcp.f32 %v990_v12  ;;  %4990 = vst [vmem:[#allocation8_spill] sm:$0xff] %v4063_v9  ;;  %4991 = vst [vmem:[#allocation9_spill] sm:$0xff] %v4065_v52 }
 0x199   : > { %v3219_v14 = vpop.eup %3218  ;;  %v4059_v20 = vsel %vm1059_vm1, %v3213_v40, %v2860_v0  ;;  %v1086_v26 = vmul.f32 2.0, %v3217_v29 }
 0x19a   : > { %v991_v36 = vadd.f32 1.0, %v3219_v14  ;;  %1430 = vrot.lane.b32.xlu1 %v4059_v20, %s3434_s11 }
 0x19b   : > { %v2861_v21 = vadd.f32 -1.0, %v1086_v26  ;;  %v4073_v14 = vpop.permute.xlu1 %1274 }
 0x19c   : > { %v3221_v48 = vpop.eup %3220  ;;  %3228 = vrcp.f32 %v991_v36  ;;  %4992 = vst [vmem:[#allocation10_spill] sm:$0xff] %v4073_v14 }
 0x19d   : > { %v3223_v12 = vpop.eup %3222  ;;  %v4069_v61 = vsel %vm1059_vm1, %v3217_v29, %v2861_v21  ;;  %v1087_v32 = vmul.f32 2.0, %v3221_v48  ;;  %v4081_v29 = vpop.permute.xlu0 %1280 }
 0x19e   : > { %v992_v40 = vadd.f32 1.0, %v3223_v12  ;;  %1432 = vrot.lane.b32.xlu0 %v4069_v61, %s3434_s11  ;;  %4993 = vst [vmem:[#allocation11_spill] sm:$0xff] %v4081_v29 }
 0x19f   : > { %v2862_v0 = vadd.f32 -1.0, %v1087_v32  ;;  %v4083_v12 = vpop.permute.xlu1 %1278 }
 0x1a0   : > { %3230 = vrcp.f32 %v992_v40  ;;  %4994 = vst [vmem:[#allocation12_spill] sm:$0xff] %v4083_v12 }
 0x1a1   : > { %v3225_v26 = vpop.eup %3224  ;;  %v4077_v36 = vsel %vm1059_vm1, %v3221_v48, %v2862_v0 }
 0x1a2   : > { %v1088_v52 = vmul.f32 2.0, %v3225_v26  ;;  %1434 = vrot.lane.b32.xlu1 %v4077_v36, %s3434_s11 }
 0x1a4   : > { %v2863_v21 = vadd.f32 -1.0, %v1088_v52  ;;  %v4095_v52 = vpop.permute.xlu1 %1282 }
 0x1a5   : > { %v3227_v9 = vpop.eup %3226  ;;  %4995 = vst [vmem:[#allocation13_spill] sm:$0xff] %v4095_v52 }
 0x1a6   : > { %v4087_v32 = vsel %vm1059_vm1, %v3225_v26, %v2863_v21  ;;  %v1089_v40 = vmul.f32 2.0, %v3227_v9 }
 0x1a7   : > { %1436 = vrot.lane.b32.xlu0 %v4087_v32, %s3434_s11 }
 0x1a8   : > { %v2864_v48 = vadd.f32 -1.0, %v1089_v40  ;;  %v1381_v0 = vpop.permute.xlu0 %1380 }
 0x1a9   : > { %v3229_v14 = vpop.eup %3228  ;;  %v1476_v21 = vmul.f32 %v1381_v0, %v3836_v30 }
 0x1aa   : > { %v1090_v50 = vmul.f32 2.0, %v3229_v14  ;;  %v4093_v7 = vsel %vm1059_vm1, %v3227_v9, %v2864_v48 }
 0x1ab   : > { %1438 = vrot.lane.b32.xlu1 %v4093_v7, %s3434_s11 }
 0x1ac   : > { %v2865_v29 = vadd.f32 -1.0, %v1090_v50  ;;  %v1383_v41 = vpop.permute.xlu0 %1382 }
 0x1ad   : > { %v3231_v26 = vpop.eup %3230  ;;  %v1477_v52 = vmul.f32 %v1383_v41, %v3843_v42 }
 0x1ae   : > { %v4102_v12 = vsel %vm1059_vm1, %v3229_v14, %v2865_v29  ;;  %v1091_v40 = vmul.f32 2.0, %v3231_v26 }
 0x1af   : > { %1440 = vrot.lane.b32.xlu0 %v4102_v12, %s3434_s11  ;;  %1540 = vrot.lane.b32.xlu1 %v1476_v21, %s3434_s11 }
 0x1b0   : > { %v2866_v9 = vadd.f32 -1.0, %v1091_v40  ;;  %v1385_v48 = vpop.permute.xlu1 %1384 }
 0x1b1   : > { %v1478_v29 = vmul.f32 %v1385_v48, %v3850_v54 }
 0x1b2   : > { %v4110_v50 = vsel %vm1059_vm1, %v3231_v26, %v2866_v9 }
 0x1b3   : > { %1442 = vrot.lane.b32.xlu0 %v4110_v50, %s3434_s11  ;;  %1542 = vrot.lane.b32.xlu1 %v1477_v52, %s3434_s11 }
 0x1b4   : > { %v1387_v14 = vpop.permute.xlu1 %1386 }
 0x1b5   : > { %v1479_v0 = vmul.f32 %v1387_v14, %v3857_v4 }
 0x1b7   : > { %1544 = vrot.lane.b32.xlu0 %v1478_v29, %s3434_s11  ;;  %1546 = vrot.lane.b32.xlu1 %v1479_v0, %s3434_s11 }
 0x1b9   : > { %v1389_v21 = vpop.permute.xlu0 %1388 }
 0x1ba   : > { %v1480_v41 = vmul.f32 %v1389_v21, %v3864_v19 }
 0x1bc   : > { %1548 = vrot.lane.b32.xlu0 %v1480_v41, %s3434_s11 }
 0x1bd   : > { %v1391_v11 = vpop.permute.xlu1 %1390 }
 0x1be   : > { %v1481_v26 = vmul.f32 %v1391_v11, %v3871_v31 }
 0x1c0   : > { %1550 = vrot.lane.b32.xlu1 %v1481_v26, %s3434_s11 }
 0x1c1   : > { %v1393_v52 = vpop.permute.xlu0 %1392 }
 0x1c2   : > { %v1482_v40 = vmul.f32 %v1393_v52, %v3878_v44 }
 0x1c4   : > { %1552 = vrot.lane.b32.xlu0 %v1482_v40, %s3434_s11 }
 0x1c5   : > { %v1395_v9 = vpop.permute.xlu1 %1394 }
 0x1c6   : > { %v1483_v48 = vmul.f32 %v1395_v9, %v3885_v58 }
 0x1c8   : > { %1554 = vrot.lane.b32.xlu1 %v1483_v48, %s3434_s11  ;;  %v1397_v14 = vpop.permute.xlu0 %1396 }
 0x1c9   : > { %v1484_v29 = vmul.f32 %v1397_v14, %v3892_v6 }
 0x1cb   : > { %1556 = vrot.lane.b32.xlu0 %v1484_v29, %s3434_s11 }
 0x1cc   : > { %v1399_v0 = vpop.permute.xlu1 %1398 }
 0x1cd   : > { %v1485_v21 = vmul.f32 %v1399_v0, %v3899_v22 }
 0x1cf   : > { %1558 = vrot.lane.b32.xlu1 %v1485_v21, %s3434_s11 }
 0x1d0   : > { %v1401_v41 = vpop.permute.xlu0 %1400 }
 0x1d1   : > { %v1486_v11 = vmul.f32 %v1401_v41, %v3906_v35 }
 0x1d3   : > { %1560 = vrot.lane.b32.xlu0 %v1486_v11, %s3434_s11 }
 0x1d4   : > { %v1403_v26 = vpop.permute.xlu1 %1402 }
 0x1d5   : > { %v1487_v52 = vmul.f32 %v1403_v26, %v3915_v51 }
 0x1d7   : > { %1562 = vrot.lane.b32.xlu1 %v1487_v52, %s3434_s11 }
 0x1d9   : > { %v1405_v40 = vpop.permute.xlu0 %1404 }
 0x1da   : > { %v1488_v9 = vmul.f32 %v1405_v40, %v3924_v3 }
 0x1dc   : > { %1564 = vrot.lane.b32.xlu0 %v1488_v9, %s3434_s11 }
 0x1dd   : > { %v1407_v48 = vpop.permute.xlu1 %1406 }
 0x1de   : > { %v1489_v14 = vmul.f32 %v1407_v48, %v3933_v23 }
 0x1e0   : > { %1566 = vrot.lane.b32.xlu1 %v1489_v14, %s3434_s11 }
 0x1e1   : > { %v1409_v29 = vpop.permute.xlu0 %1408 }
 0x1e2   : > { %v1490_v0 = vmul.f32 %v1409_v29, %v3944_v39 }
 0x1e4   : > { %1568 = vrot.lane.b32.xlu0 %v1490_v0, %s3434_s11 }
 0x1e5   : > { %v1411_v21 = vpop.permute.xlu1 %1410 }
 0x1e6   : > { %v1491_v41 = vmul.f32 %v1411_v21, %v3955_v60 }
 0x1e8   : > { %1570 = vrot.lane.b32.xlu1 %v1491_v41, %s3434_s11  ;;  %v1413_v11 = vpop.permute.xlu0 %1412 }
 0x1e9   : > { %v1492_v26 = vmul.f32 %v1413_v11, %v3966_v18 }
 0x1eb   : > { %1572 = vrot.lane.b32.xlu0 %v1492_v26, %s3434_s11 }
 0x1ec   : > { %v1415_v52 = vpop.permute.xlu1 %1414 }
 0x1ed   : > { %v1493_v40 = vmul.f32 %v1415_v52, %v3977_v38 }
 0x1ef   : > { %1574 = vrot.lane.b32.xlu1 %v1493_v40, %s3434_s11 }
 0x1f0   : > { %v1417_v9 = vpop.permute.xlu0 %1416 }
 0x1f1   : > { %v1494_v48 = vmul.f32 %v1417_v9, %v3988_v2 }
 0x1f3   : > { %1576 = vrot.lane.b32.xlu0 %v1494_v48, %s3434_s11 }
 0x1f4   : > { %v1419_v14 = vpop.permute.xlu1 %1418 }
 0x1f5   : > { %v1495_v29 = vmul.f32 %v1419_v14, %v3999_v28 }
 0x1f7   : > { %1578 = vrot.lane.b32.xlu1 %v1495_v29, %s3434_s11 }
 0x1f9   : > { %v1421_v0 = vpop.permute.xlu0 %1420 }
 0x1fa   : > { %v1496_v21 = vmul.f32 %v1421_v0, %v4010_v5 }
 0x1fc   : > { %1580 = vrot.lane.b32.xlu0 %v1496_v21, %s3434_s11 }
 0x1fd   : > { %v1423_v41 = vpop.permute.xlu1 %1422 }
 0x1fe   : > { %v1497_v11 = vmul.f32 %v1423_v41, %v4021_v37 }
 0x200   : > { %1582 = vrot.lane.b32.xlu1 %v1497_v11, %s3434_s11 }
 0x201   : > { %v1425_v26 = vpop.permute.xlu0 %1424 }
 0x202   : > { %v1498_v52 = vmul.f32 %v1425_v26, %v4031_v55 }
 0x204   : > { %1584 = vrot.lane.b32.xlu0 %v1498_v52, %s3434_s11 }
 0x205   : > { %v1427_v40 = vpop.permute.xlu1 %1426 }
 0x206   : > { %v1499_v9 = vmul.f32 %v1427_v40, %v4039_v27 }
 0x208   : > { %1586 = vrot.lane.b32.xlu1 %v1499_v9, %s3434_s11  ;;  %v1429_v48 = vpop.permute.xlu0 %1428 }
 0x209   : > { %v1500_v14 = vmul.f32 %v1429_v48, %v4049_v49 }
 0x20b   : > { %1588 = vrot.lane.b32.xlu0 %v1500_v14, %s3434_s11  ;;  %v1316_v14 = vmul.f32 %v3910_v47, %v3836_v30 }
 0x20c   : > { %v1431_v29 = vpop.permute.xlu1 %1430 }
 0x20d   : > { %v1501_v0 = vmul.f32 %v1431_v29, %v4059_v20 }
 0x20f   : > { %1590 = vrot.lane.b32.xlu1 %v1501_v0, %s3434_s11 }
 0x210   : > { %v1433_v21 = vpop.permute.xlu0 %1432 }
 0x211   : > { %v1502_v41 = vmul.f32 %v1433_v21, %v4069_v61 }
 0x213   : > { %1592 = vrot.lane.b32.xlu0 %v1502_v41, %s3434_s11 }
 0x214   : > { %v1435_v11 = vpop.permute.xlu1 %1434 }
 0x215   : > { %v1503_v26 = vmul.f32 %v1435_v11, %v4077_v36  ;;  %v1317_v11 = vmul.f32 %v3935_v25, %v3843_v42 }
 0x217   : > { %1594 = vrot.lane.b32.xlu1 %v1503_v26, %s3434_s11 }
 0x219   : > { %v1437_v52 = vpop.permute.xlu0 %1436 }
 0x21a   : > { %v1504_v40 = vmul.f32 %v1437_v52, %v4087_v32 }
 0x21c   : > { %1596 = vrot.lane.b32.xlu0 %v1504_v40, %s3434_s11 }
 0x21d   : > { %v1439_v9 = vpop.permute.xlu1 %1438 }
 0x21e   : > { %v1505_v48 = vmul.f32 %v1439_v9, %v4093_v7  ;;  %v1318_v9 = vmul.f32 %v3919_v62, %v3850_v54 }
 0x220   : > { %1598 = vrot.lane.b32.xlu1 %v1505_v48, %s3434_s11  ;;  %v1319_v48 = vmul.f32 %v3946_v43, %v3857_v4 }
 0x221   : > { %v1541_v29 = vpop.permute.xlu1 %1540  ;;  %v1441_v0 = vpop.permute.xlu0 %1440 }
 0x222   : > { %v4173_v21 = vadd.f32 %v1541_v29, %v1316_v14  ;;  %v1506_v41 = vmul.f32 %v1441_v0, %v4102_v12 }
 0x224   : > { %3232 = vtanh.f32 %v4173_v21  ;;  %1600 = vrot.lane.b32.xlu0 %v1506_v41, %s3434_s11  ;;  %v1320_v41 = vmul.f32 %v3928_v17, %v3864_v19  ;;  %v1322_v17 = vmul.f32 %v3939_v34, %v3878_v44  ;;  %v1324_v34 = vmul.f32 %v3950_v53, %v3892_v6 }
 0x225   : > { %v1543_v26 = vpop.permute.xlu1 %1542  ;;  %v1443_v52 = vpop.permute.xlu0 %1442  ;;  %v1326_v53 = vmul.f32 %v3961_v13, %v3906_v35 }
 0x226   : > { %v4180_v40 = vadd.f32 %v1543_v26, %v1317_v11  ;;  %v1507_v47 = vmul.f32 %v1443_v52, %v4110_v50  ;;  %v1321_v26 = vmul.f32 %v3957_v63, %v3871_v31  ;;  %v1323_v63 = vmul.f32 %v3970_v24, %v3885_v58 }
 0x227   : > { %v1325_v24 = vmul.f32 %v3981_v46, %v3899_v22  ;;  %v1327_v46 = vmul.f32 %v3992_v16, %v3915_v51 }
 0x228   : > { %3234 = vtanh.f32 %v4180_v40  ;;  %1602 = vrot.lane.b32.xlu1 %v1507_v47, %s3434_s11 }
 0x229   : > { %v1545_v25 = vpop.permute.xlu0 %1544  ;;  %v1547_v14 = vpop.permute.xlu1 %1546 }
 0x22a   : > { %v4189_v29 = vadd.f32 %v1545_v25, %v1318_v9  ;;  %v4191_v0 = vadd.f32 %v1547_v14, %v1319_v48 }
 0x22c   : > { %3236 = vtanh.f32 %v4189_v29 }
 0x22d   : > { %3238 = vtanh.f32 %v4191_v0 }
 0x22e   : > { %v1549_v62 = vpop.permute.xlu0 %1548 }
 0x22f   : > { %v4197_v11 = vadd.f32 %v1549_v62, %v1320_v41 }
 0x231   : > { %v3233_v43 = vpop.eup %3232  ;;  %3240 = vtanh.f32 %v4197_v11 }
 0x232   : > { %v1551_v52 = vpop.permute.xlu1 %1550  ;;  %1732 = vrot.lane.b32.xlu0 %v3233_v43, %s3434_s11 }
 0x233   : > { %v4203_v47 = vadd.f32 %v1551_v52, %v1321_v26 }
 0x235   : > { %v3235_v9 = vpop.eup %3234  ;;  %3242 = vtanh.f32 %v4203_v47 }
 0x236   : > { %1734 = vrot.lane.b32.xlu1 %v3235_v9, %s3434_s11  ;;  %v1553_v48 = vpop.permute.xlu0 %1552 }
 0x237   : > { %v4209_v25 = vadd.f32 %v1553_v48, %v1322_v17 }
 0x239   : > { %v3237_v14 = vpop.eup %3236  ;;  %3244 = vtanh.f32 %v4209_v25 }
 0x23a   : > { %v3239_v41 = vpop.eup %3238  ;;  %v1555_v62 = vpop.permute.xlu1 %1554  ;;  %1736 = vrot.lane.b32.xlu0 %v3237_v14, %s3434_s11 }
 0x23b   : > { %v4215_v43 = vadd.f32 %v1555_v62, %v1323_v63  ;;  %1738 = vrot.lane.b32.xlu1 %v3239_v41, %s3434_s11 }
 0x23d   : > { %3246 = vtanh.f32 %v4215_v43  ;;  %v1557_v26 = vpop.permute.xlu0 %1556 }
 0x23e   : > { %v3241_v52 = vpop.eup %3240  ;;  %v4221_v9 = vadd.f32 %v1557_v26, %v1324_v34 }
 0x23f   : > { %1740 = vrot.lane.b32.xlu0 %v3241_v52, %s3434_s11 }
 0x240   : > { %3248 = vtanh.f32 %v4221_v9 }
 0x241   : > { %v1559_v17 = vpop.permute.xlu1 %1558 }
 0x242   : > { %v3243_v48 = vpop.eup %3242  ;;  %v4227_v14 = vadd.f32 %v1559_v17, %v1325_v24  ;;  %v1328_v24 = vmul.f32 %v3972_v33, %v3924_v3  ;;  %v1330_v33 = vmul.f32 %v3983_v59, %v3944_v39  ;;  %v1332_v59 = vmul.f32 %v3994_v8, %v3966_v18 }
 0x243   : > { %1742 = vrot.lane.b32.xlu1 %v3243_v48, %s3434_s11  ;;  %v1334_v8 = vmul.f32 %v4005_v57, %v3988_v2 }
 0x244   : > { %3250 = vtanh.f32 %v4227_v14 }
 0x245   : > { %v1561_v63 = vpop.permute.xlu0 %1560 }
 0x246   : > { %v3245_v41 = vpop.eup %3244  ;;  %v4233_v62 = vadd.f32 %v1561_v63, %v1326_v53  ;;  %v1329_v53 = vmul.f32 %v4003_v45, %v3933_v23  ;;  %v1331_v45 = vmul.f32 %v4014_v10, %v3955_v60  ;;  %v1333_v10 = vmul.f32 %v4025_v56, %v3977_v38 }
 0x247   : > { %1744 = vrot.lane.b32.xlu0 %v3245_v41, %s3434_s11  ;;  %v1335_v56 = vmul.f32 %v4035_v1, %v3999_v28 }
 0x248   : > { %3252 = vtanh.f32 %v4233_v62 }
 0x249   : > { %v1563_v34 = vpop.permute.xlu1 %1562 }
 0x24a   : > { %v3247_v26 = vpop.eup %3246  ;;  %v4239_v52 = vadd.f32 %v1563_v34, %v1327_v46 }
 0x24b   : > { %1746 = vrot.lane.b32.xlu1 %v3247_v26, %s3434_s11 }
 0x24c   : > { %3254 = vtanh.f32 %v4239_v52 }
 0x24d   : > { %v3249_v13 = vpop.eup %3248 }
 0x24e   : > { %v1565_v17 = vpop.permute.xlu0 %1564  ;;  %1748 = vrot.lane.b32.xlu0 %v3249_v13, %s3434_s11 }
 0x24f   : > { %v4246_v48 = vadd.f32 %v1565_v17, %v1328_v24 }
 0x251   : > { %v3251_v16 = vpop.eup %3250  ;;  %3256 = vtanh.f32 %v4246_v48 }
 0x252   : > { %v1567_v63 = vpop.permute.xlu1 %1566  ;;  %1750 = vrot.lane.b32.xlu1 %v3251_v16, %s3434_s11 }
 0x253   : > { %v4252_v41 = vadd.f32 %v1567_v63, %v1329_v53 }
 0x255   : > { %v3253_v46 = vpop.eup %3252  ;;  %3258 = vtanh.f32 %v4252_v41 }
 0x256   : > { %v1569_v34 = vpop.permute.xlu0 %1568  ;;  %1752 = vrot.lane.b32.xlu0 %v3253_v46, %s3434_s11 }
 0x257   : > { %v4258_v26 = vadd.f32 %v1569_v34, %v1330_v33 }
 0x259   : > { %v3255_v13 = vpop.eup %3254  ;;  %3260 = vtanh.f32 %v4258_v26 }
 0x25a   : > { %v1571_v24 = vpop.permute.xlu1 %1570  ;;  %1754 = vrot.lane.b32.xlu1 %v3255_v13, %s3434_s11 }
 0x25b   : > { %v4264_v17 = vadd.f32 %v1571_v24, %v1331_v45 }
 0x25d   : > { %3262 = vtanh.f32 %v4264_v17  ;;  %v1573_v16 = vpop.permute.xlu0 %1572 }
 0x25e   : > { %v3257_v53 = vpop.eup %3256  ;;  %v4269_v63 = vadd.f32 %v1573_v16, %v1332_v59 }
 0x25f   : > { %1756 = vrot.lane.b32.xlu0 %v3257_v53, %s3434_s11 }
 0x260   : > { %3264 = vtanh.f32 %v4269_v63 }
 0x261   : > { %v1575_v46 = vpop.permute.xlu1 %1574 }
 0x262   : > { %v3259_v33 = vpop.eup %3258  ;;  %v4275_v34 = vadd.f32 %v1575_v46, %v1333_v10  ;;  %v1336_v10 = vmul.f32 %v4017_v15, %v4010_v5 }
 0x263   : > { %1758 = vrot.lane.b32.xlu1 %v3259_v33, %s3434_s11 }
 0x264   : > { %3266 = vtanh.f32 %v4275_v34 }
 0x265   : > { %v1577_v13 = vpop.permute.xlu0 %1576 }
 0x266   : > { %v3261_v45 = vpop.eup %3260  ;;  %v4281_v24 = vadd.f32 %v1577_v13, %v1334_v8  ;;  %v4997_v8 = vld [vmem:[#allocation5_spill] sm:$0xff] }
 0x267   : > { %1760 = vrot.lane.b32.xlu0 %v3261_v45, %s3434_s11  ;;  %v1337_v13 = vmul.f32 %v4997_v8, %v4021_v37  ;;  %v5001_v8 = vld [vmem:[#allocation7_spill] sm:$0xff] }
 0x268   : > { %3268 = vtanh.f32 %v4281_v24 }
 0x269   : > { %v1579_v59 = vpop.permute.xlu1 %1578 }
 0x26a   : > { %v3263_v16 = vpop.eup %3262  ;;  %v4287_v53 = vadd.f32 %v1579_v59, %v1335_v56 }
 0x26b   : > { %1762 = vrot.lane.b32.xlu1 %v3263_v16, %s3434_s11  ;;  %v4999_v16 = vld [vmem:[#allocation3_spill] sm:$0xff] }
 0x26c   : > { %3270 = vtanh.f32 %v4287_v53  ;;  %v1338_v15 = vmul.f32 %v4999_v16, %v4031_v55 }
 0x26d   : > { %v3265_v57 = vpop.eup %3264 }
 0x26e   : > { %v1581_v46 = vpop.permute.xlu0 %1580  ;;  %1764 = vrot.lane.b32.xlu0 %v3265_v57, %s3434_s11 }
 0x26f   : > { %v4294_v33 = vadd.f32 %v1581_v46, %v1336_v10 }
 0x271   : > { %4996 = vst [vmem:[#allocation14_spill] sm:$0xff] %v4294_v33  ;;  %v3267_v1 = vpop.eup %3266  ;;  %3272 = vtanh.f32 %v4294_v33  ;;  %v1339_v33 = vmul.f32 %v5001_v8, %v4039_v27 }
 0x272   : > { %v1583_v45 = vpop.permute.xlu1 %1582  ;;  %1766 = vrot.lane.b32.xlu1 %v3267_v1, %s3434_s11 }
 0x273   : > { %v4300_v56 = vadd.f32 %v1583_v45, %v1337_v13  ;;  %v5003_v45 = vld [vmem:[#allocation4_spill] sm:$0xff] }
 0x274   : > { %v1340_v16 = vmul.f32 %v5003_v45, %v4049_v49 }
 0x275   : > { %4998 = vst [vmem:[#allocation5_spill] sm:$0xff] %v4300_v56  ;;  %v3269_v59 = vpop.eup %3268  ;;  %3274 = vtanh.f32 %v4300_v56 }
 0x276   : > { %v1585_v57 = vpop.permute.xlu0 %1584  ;;  %1768 = vrot.lane.b32.xlu0 %v3269_v59, %s3434_s11 }
 0x277   : > { %v4306_v10 = vadd.f32 %v1585_v57, %v1338_v15  ;;  %v5005_v57 = vld [vmem:[#allocation8_spill] sm:$0xff] }
 0x278   : > { %v1341_v8 = vmul.f32 %v5005_v57, %v4059_v20 }
 0x279   : > { %5000 = vst [vmem:[#allocation3_spill] sm:$0xff] %v4306_v10  ;;  %v3271_v46 = vpop.eup %3270  ;;  %3276 = vtanh.f32 %v4306_v10 }
 0x27a   : > { %v1587_v1 = vpop.permute.xlu1 %1586  ;;  %1770 = vrot.lane.b32.xlu1 %v3271_v46, %s3434_s11 }
 0x27b   : > { %v4312_v13 = vadd.f32 %v1587_v1, %v1339_v33  ;;  %v5007_v1 = vld [vmem:[#allocation6_spill] sm:$0xff] }
 0x27c   : > { %v1342_v45 = vmul.f32 %v5007_v1, %v4069_v61  ;;  %v5010_v1 = vld [vmem:[#allocation9_spill] sm:$0xff] }
 0x27d   : > { %5002 = vst [vmem:[#allocation7_spill] sm:$0xff] %v4312_v13  ;;  %3278 = vtanh.f32 %v4312_v13  ;;  %v1589_v56 = vpop.permute.xlu0 %1588 }
 0x27e   : > { %v3273_v59 = vpop.eup %3272  ;;  %v4317_v15 = vadd.f32 %v1589_v56, %v1340_v16 }
 0x27f   : > { %1772 = vrot.lane.b32.xlu0 %v3273_v59, %s3434_s11  ;;  %v5009_v59 = vld [vmem:[#allocation10_spill] sm:$0xff] }
 0x280   : > { %5004 = vst [vmem:[#allocation4_spill] sm:$0xff] %v4317_v15  ;;  %3280 = vtanh.f32 %v4317_v15  ;;  %v1343_v57 = vmul.f32 %v5009_v59, %v4077_v36 }
 0x281   : > { %v1591_v10 = vpop.permute.xlu1 %1590 }
 0x282   : > { %v3275_v46 = vpop.eup %3274  ;;  %v4323_v33 = vadd.f32 %v1591_v10, %v1341_v8 }
 0x283   : > { %1774 = vrot.lane.b32.xlu1 %v3275_v46, %s3434_s11 }
 0x284   : > { %5006 = vst [vmem:[#allocation8_spill] sm:$0xff] %v4323_v33  ;;  %3282 = vtanh.f32 %v4323_v33 }
 0x285   : > { %v1593_v56 = vpop.permute.xlu0 %1592 }
 0x286   : > { %v3277_v16 = vpop.eup %3276  ;;  %v4329_v13 = vadd.f32 %v1593_v56, %v1342_v45  ;;  %v1344_v45 = vmul.f32 %v5010_v1, %v4087_v32  ;;  %v5013_v1 = vld [vmem:[#allocation11_spill] sm:$0xff] }
 0x287   : > { %1776 = vrot.lane.b32.xlu0 %v3277_v16, %s3434_s11 }
 0x288   : > { %5008 = vst [vmem:[#allocation6_spill] sm:$0xff] %v4329_v13  ;;  %3284 = vtanh.f32 %v4329_v13  ;;  %v5011_v13 = vld [vmem:[#allocation12_spill] sm:$0xff] }
 0x289   : > { %v1595_v10 = vpop.permute.xlu1 %1594  ;;  %v1345_v33 = vmul.f32 %v5011_v13, %v4093_v7 }
 0x28a   : > { %v3279_v8 = vpop.eup %3278  ;;  %v4335_v15 = vadd.f32 %v1595_v10, %v1343_v57  ;;  %v1863_v10 = vld [vmem:[%s4972_s2 + $0x18] sm:$0xff] }
 0x28b   : > { %1778 = vrot.lane.b32.xlu1 %v3279_v8, %s3434_s11  ;;  %3036 = vmatprep.subr.mxu1 %v1863_v10 }
 0x28c   : > { %3286 = vtanh.f32 %v4335_v15  ;;  %3037 = vmatpush3.msra.mxu1 %v1863_v10 }
 0x28d   : > { %v3281_v46 = vpop.eup %3280 }
 0x28e   : > { %v1597_v56 = vpop.permute.xlu0 %1596  ;;  %1780 = vrot.lane.b32.xlu0 %v3281_v46, %s3434_s11 }
 0x28f   : > { %v4342_v16 = vadd.f32 %v1597_v56, %v1344_v45  ;;  %v1346_v45 = vmul.f32 %v5013_v1, %v4102_v12  ;;  %v1862_v56 = vld [vmem:[%s4972_s2 + $0x10] sm:$0xff]  ;;  %v1861_v1 = vld [vmem:[%s4972_s2 + $0x8] sm:$0xff] }
 0x290   : > { %3038 = vmatprep.subr.mxu1 %v1862_v56 }
 0x291   : > { %v3283_v59 = vpop.eup %3282  ;;  %3288 = vtanh.f32 %v4342_v16  ;;  %3039 = vmatpush3.msra.mxu1 %v1862_v56 }
 0x292   : > { %v1599_v57 = vpop.permute.xlu1 %1598  ;;  %1782 = vrot.lane.b32.xlu1 %v3283_v59, %s3434_s11  ;;  %3040 = vmatprep.subr.mxu1 %v1861_v1 }
 0x293   : > { %v4351_v8 = vadd.f32 %v1599_v57, %v1345_v33  ;;  %v5014_v57 = vld [vmem:[#allocation13_spill] sm:$0xff]  ;;  %3041 = vmatpush3.msra.mxu1 %v1861_v1 }
 0x294   : > { %v1347_v10 = vmul.f32 %v5014_v57, %v4110_v50 }
 0x295   : > { %5012 = vst [vmem:[#allocation10_spill] sm:$0xff] %v4351_v8  ;;  %v3285_v46 = vpop.eup %3284  ;;  %3290 = vtanh.f32 %v4351_v8 }
 0x296   : > { %v1601_v13 = vpop.permute.xlu0 %1600  ;;  %1784 = vrot.lane.b32.xlu0 %v3285_v46, %s3434_s11 }
 0x297   : > { %v4360_v59 = vadd.f32 %v1601_v13, %v1346_v45  ;;  %v1860_v45 = vld [vmem:[%s4972_s2] sm:$0xff] }
 0x298   : > { %3042 = vmatprep.subr.mxu1 %v1860_v45 }
 0x299   : > { %v3287_v33 = vpop.eup %3286  ;;  %3292 = vtanh.f32 %v4360_v59  ;;  %3043 = vmatpush3.msra.mxu1 %v1860_v45 }
 0x29a   : > { %v1603_v8 = vpop.permute.xlu1 %1602  ;;  %1786 = vrot.lane.b32.xlu1 %v3287_v33, %s3434_s11 }
 0x29b   : > { %v4369_v46 = vadd.f32 %v1603_v8, %v1347_v10 }
 0x29d   : > { %5015 = vst [vmem:[#allocation9_spill] sm:$0xff] %v4369_v46  ;;  %3294 = vtanh.f32 %v4369_v46 }
 0x29e   : > { %v3289_v13 = vpop.eup %3288 }
 0x29f   : > { %1788 = vrot.lane.b32.xlu0 %v3289_v13, %s3434_s11 }
 0x2a2   : > { %v3291_v56 = vpop.eup %3290 }
 0x2a3   : > { %1790 = vrot.lane.b32.xlu1 %v3291_v56, %s3434_s11 }
 0x2a4   : > { %v1733_v57 = vpop.permute.xlu0 %1732 }
 0x2a5   : > { %v1828_v33 = vmul.f32 %v1733_v57, %v3836_v30 }
 0x2a6   : > { %v3293_v8 = vpop.eup %3292 }
 0x2a7   : > { %1792 = vrot.lane.b32.xlu0 %v3293_v8, %s3434_s11  ;;  %1900 = vrot.lane.b32.xlu1 %v1828_v33, %s3435_s5 }
 0x2a8   : > { %v1735_v10 = vpop.permute.xlu1 %1734 }
 0x2a9   : > { %v1829_v1 = vmul.f32 %v1735_v10, %v3843_v42 }
 0x2aa   : > { %v3295_v46 = vpop.eup %3294 }
 0x2ab   : > { %1794 = vrot.lane.b32.xlu0 %v3295_v46, %s3434_s11  ;;  %1902 = vrot.lane.b32.xlu1 %v1829_v1, %s3435_s5 }
 0x2ac   : > { %v1737_v45 = vpop.permute.xlu0 %1736 }
 0x2ad   : > { %v1830_v13 = vmul.f32 %v1737_v45, %v3850_v54  ;;  %v1739_v56 = vpop.permute.xlu1 %1738 }
 0x2ae   : > { %v1831_v30 = vmul.f32 %v1739_v56, %v3857_v4 }
 0x2af   : > { %1904 = vrot.lane.b32.xlu0 %v1830_v13, %s3435_s5 }
 0x2b0   : > { %1906 = vrot.lane.b32.xlu1 %v1831_v30, %s3435_s5 }
 0x2b1   : > { %v1741_v57 = vpop.permute.xlu0 %1740 }
 0x2b2   : > { %v1832_v33 = vmul.f32 %v1741_v57, %v3864_v19 }
 0x2b4   : > { %1908 = vrot.lane.b32.xlu0 %v1832_v33, %s3435_s5 }
 0x2b5   : > { %v1743_v42 = vpop.permute.xlu1 %1742 }
 0x2b6   : > { %v1833_v46 = vmul.f32 %v1743_v42, %v3871_v31 }
 0x2b8   : > { %1910 = vrot.lane.b32.xlu1 %v1833_v46, %s3435_s5 }
 0x2b9   : > { %v1745_v8 = vpop.permute.xlu0 %1744 }
 0x2ba   : > { %v1834_v54 = vmul.f32 %v1745_v8, %v3878_v44 }
 0x2bc   : > { %1912 = vrot.lane.b32.xlu0 %v1834_v54, %s3435_s5 }
 0x2bd   : > { %v1747_v4 = vpop.permute.xlu1 %1746 }
 0x2be   : > { %v1835_v10 = vmul.f32 %v1747_v4, %v3885_v58 }
 0x2c0   : > { %1914 = vrot.lane.b32.xlu1 %v1835_v10, %s3435_s5  ;;  %v1749_v1 = vpop.permute.xlu0 %1748 }
 0x2c1   : > { %v1836_v19 = vmul.f32 %v1749_v1, %v3892_v6 }
 0x2c3   : > { %1916 = vrot.lane.b32.xlu0 %v1836_v19, %s3435_s5 }
 0x2c4   : > { %v1751_v45 = vpop.permute.xlu1 %1750 }
 0x2c5   : > { %v1837_v31 = vmul.f32 %v1751_v45, %v3899_v22 }
 0x2c7   : > { %1918 = vrot.lane.b32.xlu1 %v1837_v31, %s3435_s5 }
 0x2c8   : > { %v1753_v13 = vpop.permute.xlu0 %1752 }
 0x2c9   : > { %v1838_v44 = vmul.f32 %v1753_v13, %v3906_v35 }
 0x2cb   : > { %1920 = vrot.lane.b32.xlu0 %v1838_v44, %s3435_s5 }
 0x2cc   : > { %v1755_v56 = vpop.permute.xlu1 %1754 }
 0x2cd   : > { %v1839_v58 = vmul.f32 %v1755_v56, %v3915_v51 }
 0x2cf   : > { %1922 = vrot.lane.b32.xlu1 %v1839_v58, %s3435_s5 }
 0x2d1   : > { %v1757_v30 = vpop.permute.xlu0 %1756 }
 0x2d2   : > { %v1840_v6 = vmul.f32 %v1757_v30, %v3924_v3 }
 0x2d4   : > { %1924 = vrot.lane.b32.xlu0 %v1840_v6, %s3435_s5 }
 0x2d5   : > { %v1759_v57 = vpop.permute.xlu1 %1758 }
 0x2d6   : > { %v1841_v22 = vmul.f32 %v1759_v57, %v3933_v23 }
 0x2d8   : > { %1926 = vrot.lane.b32.xlu1 %v1841_v22, %s3435_s5  ;;  %v5017_v22 = vld [vmem:[#allocation5_spill] sm:$0xff] }
 0x2d9   : > { %v1761_v33 = vpop.permute.xlu0 %1760 }
 0x2da   : > { %v1842_v35 = vmul.f32 %v1761_v33, %v3944_v39  ;;  %v5018_v33 = vld [vmem:[#allocation3_spill] sm:$0xff] }
 0x2dc   : > { %1928 = vrot.lane.b32.xlu0 %v1842_v35, %s3435_s5 }
 0x2dd   : > { %v1763_v42 = vpop.permute.xlu1 %1762 }
 0x2de   : > { %v1843_v51 = vmul.f32 %v1763_v42, %v3955_v60  ;;  %v5019_v42 = vld [vmem:[#allocation7_spill] sm:$0xff] }
 0x2e0   : > { %1930 = vrot.lane.b32.xlu1 %v1843_v51, %s3435_s5  ;;  %v1765_v46 = vpop.permute.xlu0 %1764 }
 0x2e1   : > { %v1844_v3 = vmul.f32 %v1765_v46, %v3966_v18  ;;  %v5020_v46 = vld [vmem:[#allocation4_spill] sm:$0xff] }
 0x2e3   : > { %1932 = vrot.lane.b32.xlu0 %v1844_v3, %s3435_s5 }
 0x2e4   : > { %v1767_v8 = vpop.permute.xlu1 %1766 }
 0x2e5   : > { %v1845_v23 = vmul.f32 %v1767_v8, %v3977_v38  ;;  %v5021_v8 = vld [vmem:[#allocation8_spill] sm:$0xff] }
 0x2e7   : > { %1934 = vrot.lane.b32.xlu1 %v1845_v23, %s3435_s5 }
 0x2e8   : > { %v1769_v54 = vpop.permute.xlu0 %1768 }
 0x2e9   : > { %v1846_v39 = vmul.f32 %v1769_v54, %v3988_v2  ;;  %v5022_v54 = vld [vmem:[#allocation6_spill] sm:$0xff] }
 0x2eb   : > { %1936 = vrot.lane.b32.xlu0 %v1846_v39, %s3435_s5 }
 0x2ec   : > { %v1771_v4 = vpop.permute.xlu1 %1770 }
 0x2ed   : > { %v1847_v60 = vmul.f32 %v1771_v4, %v3999_v28 }
 0x2ef   : > { %1938 = vrot.lane.b32.xlu1 %v1847_v60, %s3435_s5 }
 0x2f1   : > { %v1773_v10 = vpop.permute.xlu0 %1772 }
 0x2f2   : > { %v1848_v18 = vmul.f32 %v1773_v10, %v4010_v5  ;;  %v5023_v10 = vld [vmem:[#allocation10_spill] sm:$0xff] }
 0x2f4   : > { %1940 = vrot.lane.b32.xlu0 %v1848_v18, %s3435_s5 }
 0x2f5   : > { %v1775_v1 = vpop.permute.xlu1 %1774 }
 0x2f6   : > { %v1849_v38 = vmul.f32 %v1775_v1, %v4021_v37  ;;  %v5025_v1 = vld [vmem:[#allocation2_spill] sm:$0xff] }
 0x2f8   : > { %1942 = vrot.lane.b32.xlu1 %v1849_v38, %s3435_s5  ;;  %v1866_v38 = vsub.s32 1, %v5025_v1 }
 0x2f9   : > { %v1777_v19 = vpop.permute.xlu0 %1776 }
 0x2fa   : > { %v1850_v2 = vmul.f32 %v1777_v19, %v4031_v55  ;;  %v3424_v19 = vld [vmem:[%s4972_s2 + $0x20] sm:$0xff] }
 0x2fc   : > { %1944 = vrot.lane.b32.xlu0 %v1850_v2, %s3435_s5  ;;  %v4645_v2 = vrot.slane %v3424_v19, %v1866_v38 }
 0x2fd   : > { %v1779_v45 = vpop.permute.xlu1 %1778 }
 0x2fe   : > { %v1851_v28 = vmul.f32 %v1779_v45, %v4039_v27 }
 0x300   : > { %1946 = vrot.lane.b32.xlu1 %v1851_v28, %s3435_s5  ;;  %v1781_v31 = vpop.permute.xlu0 %1780 }
 0x301   : > { %v1852_v5 = vmul.f32 %v1781_v31, %v4049_v49 }
 0x303   : > { %1948 = vrot.lane.b32.xlu0 %v1852_v5, %s3435_s5 }
 0x304   : > { %v1783_v13 = vpop.permute.xlu1 %1782 }
 0x305   : > { %v1853_v37 = vmul.f32 %v1783_v13, %v4059_v20 }
 0x307   : > { %1950 = vrot.lane.b32.xlu1 %v1853_v37, %s3435_s5 }
 0x308   : > { %v1785_v44 = vpop.permute.xlu0 %1784 }
 0x309   : > { %v1854_v55 = vmul.f32 %v1785_v44, %v4069_v61 }
 0x30b   : > { %1952 = vrot.lane.b32.xlu0 %v1854_v55, %s3435_s5 }
 0x30c   : > { %v1787_v56 = vpop.permute.xlu1 %1786 }
 0x30d   : > { %v1855_v27 = vmul.f32 %v1787_v56, %v4077_v36 }
 0x30f   : > { %1954 = vrot.lane.b32.xlu1 %v1855_v27, %s3435_s5 }
 0x311   : > { %v1789_v58 = vpop.permute.xlu0 %1788 }
 0x312   : > { %v1856_v49 = vmul.f32 %v1789_v58, %v4087_v32 }
 0x314   : > { %1956 = vrot.lane.b32.xlu0 %v1856_v49, %s3435_s5 }
 0x315   : > { %v1791_v30 = vpop.permute.xlu1 %1790 }
 0x316   : > { %v1857_v20 = vmul.f32 %v1791_v30, %v4093_v7 }
 0x318   : > { %1958 = vrot.lane.b32.xlu1 %v1857_v20, %s3435_s5 }
 0x319   : > { %v1901_v61 = vpop.permute.xlu1 %1900  ;;  %v1793_v36 = vpop.permute.xlu0 %1792 }
 0x31a   : > { %2638 = vst.msk [vmem:[%s4442_s9 + $0x8] sm:$0xff] %vm1964_vm2, %v1901_v61  ;;  %v1858_v7 = vmul.f32 %v1793_v36, %v4102_v12  ;;  %3044 = vmatprep.mubr.msk.f32.mxu1 %vm1964_vm2, %v1901_v61 }
 0x31b   : > { %2671 = vst.msk [vmem:[%s4442_s9 + $0x8] sm:$0xff] %vm2670_vm3, %v4173_v21 }
 0x31c   : > { %1960 = vrot.lane.b32.xlu0 %v1858_v7, %s3435_s5 }
 0x31d   : > { %v1903_v32 = vpop.permute.xlu1 %1902  ;;  %v1795_v6 = vpop.permute.xlu0 %1794 }
 0x31e   : > { %2639 = vst.msk [vmem:[%s4442_s9 + $0x18] sm:$0xff] %vm1964_vm2, %v1903_v32  ;;  %v1859_v57 = vmul.f32 %v1795_v6, %v4110_v50  ;;  %3045 = vmatmul.mubr.msk.f32.vlgmr.msra.gmra.mxu1 %vm1964_vm2, %v1903_v32 }
 0x31f   : > { %2672 = vst.msk [vmem:[%s4442_s9 + $0x18] sm:$0xff] %vm2670_vm3, %v4180_v40 }
 0x320   : > { %1962 = vrot.lane.b32.xlu1 %v1859_v57, %s3435_s5 }
 0x321   : > { %v1905_v12 = vpop.permute.xlu0 %1904 }
 0x322   : > { %2640 = vst.msk [vmem:[%s4442_s9 + $0x28] sm:$0xff] %vm1964_vm2, %v1905_v12  ;;  %v1907_v21 = vpop.permute.xlu1 %1906  ;;  %3047 = vmatprep.mubr.msk.f32.mxu1 %vm1964_vm2, %v1905_v12 }
 0x323   : > { %2673 = vst.msk [vmem:[%s4442_s9 + $0x28] sm:$0xff] %vm2670_vm3, %v4189_v29  ;;  %3048 = vmatmul.mubr.msk.f32.gmra.mxu1 %vm1964_vm2, %v1907_v21 }
 0x324   : > { %2641 = vst.msk [vmem:[%s4442_s9 + $0x38] sm:$0xff] %vm1964_vm2, %v1907_v21 }
 0x325   : > { %2674 = vst.msk [vmem:[%s4442_s9 + $0x38] sm:$0xff] %vm2670_vm3, %v4191_v0 }
 0x326   : > { %v1909_v50 = vpop.permute.xlu0 %1908 }
 0x327   : > { %2642 = vst.msk [vmem:[%s4442_s9 + $0x48] sm:$0xff] %vm1964_vm2, %v1909_v50  ;;  %3050 = vmatprep.mubr.msk.f32.mxu1 %vm1964_vm2, %v1909_v50 }
 0x328   : > { %2675 = vst.msk [vmem:[%s4442_s9 + $0x48] sm:$0xff] %vm2670_vm3, %v4197_v11 }
 0x32a   : > { %v1911_v40 = vpop.permute.xlu1 %1910 }
 0x32b   : > { %2643 = vst.msk [vmem:[%s4442_s9 + $0x58] sm:$0xff] %vm1964_vm2, %v1911_v40  ;;  %3051 = vmatmul.mubr.msk.f32.gmra.mxu1 %vm1964_vm2, %v1911_v40 }
 0x32c   : > { %2676 = vst.msk [vmem:[%s4442_s9 + $0x58] sm:$0xff] %vm2670_vm3, %v4203_v47 }
 0x32e   : > { %v1913_v29 = vpop.permute.xlu0 %1912 }
 0x32f   : > { %2644 = vst.msk [vmem:[%s4442_s9 + $0x68] sm:$0xff] %vm1964_vm2, %v1913_v29  ;;  %3053 = vmatprep.mubr.msk.f32.mxu1 %vm1964_vm2, %v1913_v29 }
 0x330   : > { %2677 = vst.msk [vmem:[%s4442_s9 + $0x68] sm:$0xff] %vm2670_vm3, %v4209_v25 }
 0x332   : > { %v1915_v0 = vpop.permute.xlu1 %1914 }
 0x333   : > { %2645 = vst.msk [vmem:[%s4442_s9 + $0x78] sm:$0xff] %vm1964_vm2, %v1915_v0  ;;  %3054 = vmatmul.mubr.msk.f32.gmra.mxu1 %vm1964_vm2, %v1915_v0 }
 0x334   : > { %2678 = vst.msk [vmem:[%s4442_s9 + $0x78] sm:$0xff] %vm2670_vm3, %v4215_v43 }
 0x335   : > { %v1917_v11 = vpop.permute.xlu0 %1916 }
 0x336   : > { %2646 = vst.msk [vmem:[%s4442_s9 + $0x88] sm:$0xff] %vm1964_vm2, %v1917_v11  ;;  %3056 = vmatprep.mubr.msk.f32.mxu1 %vm1964_vm2, %v1917_v11 }
 0x337   : > { %2679 = vst.msk [vmem:[%s4442_s9 + $0x88] sm:$0xff] %vm2670_vm3, %v4221_v9 }
 0x339   : > { %v1919_v47 = vpop.permute.xlu1 %1918 }
 0x33a   : > { %2647 = vst.msk [vmem:[%s4442_s9 + $0x98] sm:$0xff] %vm1964_vm2, %v1919_v47  ;;  %3057 = vmatmul.mubr.msk.f32.gmra.mxu1 %vm1964_vm2, %v1919_v47 }
 0x33b   : > { %2680 = vst.msk [vmem:[%s4442_s9 + $0x98] sm:$0xff] %vm2670_vm3, %v4227_v14 }
 0x33d   : > { %v1921_v25 = vpop.permute.xlu0 %1920 }
 0x33e   : > { %2648 = vst.msk [vmem:[%s4442_s9 + $0xa8] sm:$0xff] %vm1964_vm2, %v1921_v25  ;;  %3059 = vmatprep.mubr.msk.f32.mxu1 %vm1964_vm2, %v1921_v25 }
 0x33f   : > { %2681 = vst.msk [vmem:[%s4442_s9 + $0xa8] sm:$0xff] %vm2670_vm3, %v4233_v62 }
 0x341   : > { %v1923_v43 = vpop.permute.xlu1 %1922 }
 0x342   : > { %2649 = vst.msk [vmem:[%s4442_s9 + $0xb8] sm:$0xff] %vm1964_vm2, %v1923_v43  ;;  %3060 = vmatmul.mubr.msk.f32.gmra.mxu1 %vm1964_vm2, %v1923_v43 }
 0x343   : > { %2682 = vst.msk [vmem:[%s4442_s9 + $0xb8] sm:$0xff] %vm2670_vm3, %v4239_v52 }
 0x346   : > { %v1925_v9 = vpop.permute.xlu0 %1924 }
 0x347   : > { %2650 = vst.msk [vmem:[%s4442_s9 + $0xc8] sm:$0xff] %vm1964_vm2, %v1925_v9  ;;  %3062 = vmatprep.mubr.msk.f32.mxu1 %vm1964_vm2, %v1925_v9 }
 0x348   : > { %2683 = vst.msk [vmem:[%s4442_s9 + $0xc8] sm:$0xff] %vm2670_vm3, %v4246_v48 }
 0x34a   : > { %v1927_v14 = vpop.permute.xlu1 %1926 }
 0x34b   : > { %2651 = vst.msk [vmem:[%s4442_s9 + $0xd8] sm:$0xff] %vm1964_vm2, %v1927_v14  ;;  %3063 = vmatmul.mubr.msk.f32.gmra.mxu1 %vm1964_vm2, %v1927_v14 }
 0x34c   : > { %2684 = vst.msk [vmem:[%s4442_s9 + $0xd8] sm:$0xff] %vm2670_vm3, %v4252_v41 }
 0x34e   : > { %v1929_v62 = vpop.permute.xlu0 %1928 }
 0x34f   : > { %2652 = vst.msk [vmem:[%s4442_s9 + $0xe8] sm:$0xff] %vm1964_vm2, %v1929_v62  ;;  %3065 = vmatprep.mubr.msk.f32.mxu1 %vm1964_vm2, %v1929_v62 }
 0x350   : > { %2685 = vst.msk [vmem:[%s4442_s9 + $0xe8] sm:$0xff] %vm2670_vm3, %v4258_v26 }
 0x352   : > { %v1931_v52 = vpop.permute.xlu1 %1930 }
 0x353   : > { %2653 = vst.msk [vmem:[%s4442_s9 + $0xf8] sm:$0xff] %vm1964_vm2, %v1931_v52  ;;  %3066 = vmatmul.mubr.msk.f32.gmra.mxu1 %vm1964_vm2, %v1931_v52 }
 0x354   : > { %2686 = vst.msk [vmem:[%s4442_s9 + $0xf8] sm:$0xff] %vm2670_vm3, %v4264_v17 }
 0x355   : > { %v1933_v48 = vpop.permute.xlu0 %1932 }
 0x356   : > { %2654 = vst.msk [vmem:[%s4442_s9 + $0x108] sm:$0xff] %vm1964_vm2, %v1933_v48  ;;  %3068 = vmatprep.mubr.msk.f32.mxu1 %vm1964_vm2, %v1933_v48 }
 0x357   : > { %2687 = vst.msk [vmem:[%s4442_s9 + $0x108] sm:$0xff] %vm2670_vm3, %v4269_v63 }
 0x359   : > { %v1935_v41 = vpop.permute.xlu1 %1934 }
 0x35a   : > { %2655 = vst.msk [vmem:[%s4442_s9 + $0x118] sm:$0xff] %vm1964_vm2, %v1935_v41  ;;  %3069 = vmatmul.mubr.msk.f32.gmra.mxu1 %vm1964_vm2, %v1935_v41 }
 0x35b   : > { %2688 = vst.msk [vmem:[%s4442_s9 + $0x118] sm:$0xff] %vm2670_vm3, %v4275_v34  ;;  %v5016_v34 = vld [vmem:[#allocation14_spill] sm:$0xff] }
 0x35d   : > { %v1937_v26 = vpop.permute.xlu0 %1936 }
 0x35e   : > { %2656 = vst.msk [vmem:[%s4442_s9 + $0x128] sm:$0xff] %vm1964_vm2, %v1937_v26  ;;  %3071 = vmatprep.mubr.msk.f32.mxu1 %vm1964_vm2, %v1937_v26 }
 0x35f   : > { %2689 = vst.msk [vmem:[%s4442_s9 + $0x128] sm:$0xff] %vm2670_vm3, %v4281_v24 }
 0x361   : > { %v1939_v17 = vpop.permute.xlu1 %1938 }
 0x362   : > { %2657 = vst.msk [vmem:[%s4442_s9 + $0x138] sm:$0xff] %vm1964_vm2, %v1939_v17  ;;  %3072 = vmatmul.mubr.msk.f32.gmra.mxu1 %vm1964_vm2, %v1939_v17 }
 0x363   : > { %2690 = vst.msk [vmem:[%s4442_s9 + $0x138] sm:$0xff] %vm2670_vm3, %v4287_v53 }
 0x366   : > { %v1941_v63 = vpop.permute.xlu0 %1940 }
 0x367   : > { %2658 = vst.msk [vmem:[%s4442_s9 + $0x148] sm:$0xff] %vm1964_vm2, %v1941_v63  ;;  %3074 = vmatprep.mubr.msk.f32.mxu1 %vm1964_vm2, %v1941_v63 }
 0x368   : > { %2691 = vst.msk [vmem:[%s4442_s9 + $0x148] sm:$0xff] %vm2670_vm3, %v5016_v34 }
 0x36a   : > { %v1943_v24 = vpop.permute.xlu1 %1942 }
 0x36b   : > { %2659 = vst.msk [vmem:[%s4442_s9 + $0x158] sm:$0xff] %vm1964_vm2, %v1943_v24  ;;  %3075 = vmatmul.mubr.msk.f32.gmra.mxu1 %vm1964_vm2, %v1943_v24 }
 0x36c   : > { %2692 = vst.msk [vmem:[%s4442_s9 + $0x158] sm:$0xff] %vm2670_vm3, %v5017_v22 }
 0x36e   : > { %v1945_v53 = vpop.permute.xlu0 %1944 }
 0x36f   : > { %2660 = vst.msk [vmem:[%s4442_s9 + $0x168] sm:$0xff] %vm1964_vm2, %v1945_v53  ;;  %3077 = vmatprep.mubr.msk.f32.mxu1 %vm1964_vm2, %v1945_v53 }
 0x370   : > { %2693 = vst.msk [vmem:[%s4442_s9 + $0x168] sm:$0xff] %vm2670_vm3, %v5018_v33 }
 0x372   : > { %v1947_v35 = vpop.permute.xlu1 %1946 }
 0x373   : > { %2661 = vst.msk [vmem:[%s4442_s9 + $0x178] sm:$0xff] %vm1964_vm2, %v1947_v35  ;;  %3078 = vmatmul.mubr.msk.f32.gmra.mxu1 %vm1964_vm2, %v1947_v35 }
 0x374   : > { %2694 = vst.msk [vmem:[%s4442_s9 + $0x178] sm:$0xff] %vm2670_vm3, %v5019_v42 }
 0x375   : > { %v1949_v51 = vpop.permute.xlu0 %1948 }
 0x376   : > { %2662 = vst.msk [vmem:[%s4442_s9 + $0x188] sm:$0xff] %vm1964_vm2, %v1949_v51  ;;  %3080 = vmatprep.mubr.msk.f32.mxu1 %vm1964_vm2, %v1949_v51 }
 0x377   : > { %2695 = vst.msk [vmem:[%s4442_s9 + $0x188] sm:$0xff] %vm2670_vm3, %v5020_v46 }
 0x379   : > { %v1951_v3 = vpop.permute.xlu1 %1950 }
 0x37a   : > { %2663 = vst.msk [vmem:[%s4442_s9 + $0x198] sm:$0xff] %vm1964_vm2, %v1951_v3  ;;  %3081 = vmatmul.mubr.msk.f32.gmra.mxu1 %vm1964_vm2, %v1951_v3 }
 0x37b   : > { %2696 = vst.msk [vmem:[%s4442_s9 + $0x198] sm:$0xff] %vm2670_vm3, %v5021_v8 }
 0x37d   : > { %v1953_v23 = vpop.permute.xlu0 %1952 }
 0x37e   : > { %2664 = vst.msk [vmem:[%s4442_s9 + $0x1a8] sm:$0xff] %vm1964_vm2, %v1953_v23  ;;  %3083 = vmatprep.mubr.msk.f32.mxu1 %vm1964_vm2, %v1953_v23 }
 0x37f   : > { %2697 = vst.msk [vmem:[%s4442_s9 + $0x1a8] sm:$0xff] %vm2670_vm3, %v5022_v54 }
 0x381   : > { %v1955_v39 = vpop.permute.xlu1 %1954 }
 0x382   : > { %2665 = vst.msk [vmem:[%s4442_s9 + $0x1b8] sm:$0xff] %vm1964_vm2, %v1955_v39  ;;  %3084 = vmatmul.mubr.msk.f32.gmra.mxu1 %vm1964_vm2, %v1955_v39 }
 0x383   : > { %2698 = vst.msk [vmem:[%s4442_s9 + $0x1b8] sm:$0xff] %vm2670_vm3, %v4335_v15 }
 0x386   : > { %v1957_v4 = vpop.permute.xlu0 %1956 }
 0x387   : > { %2666 = vst.msk [vmem:[%s4442_s9 + $0x1c8] sm:$0xff] %vm1964_vm2, %v1957_v4  ;;  %3086 = vmatprep.mubr.msk.f32.mxu1 %vm1964_vm2, %v1957_v4 }
 0x388   : > { %2699 = vst.msk [vmem:[%s4442_s9 + $0x1c8] sm:$0xff] %vm2670_vm3, %v4342_v16  ;;  %v5024_v16 = vld [vmem:[#allocation9_spill] sm:$0xff] }
 0x38a   : > { %v1959_v60 = vpop.permute.xlu1 %1958 }
 0x38b   : > { %2667 = vst.msk [vmem:[%s4442_s9 + $0x1d8] sm:$0xff] %vm1964_vm2, %v1959_v60  ;;  %3087 = vmatmul.mubr.msk.f32.gmra.mxu1 %vm1964_vm2, %v1959_v60 }
 0x38c   : > { %2700 = vst.msk [vmem:[%s4442_s9 + $0x1d8] sm:$0xff] %vm2670_vm3, %v5023_v10 }
 0x38e   : > { %v1961_v18 = vpop.permute.xlu0 %1960 }
 0x38f   : > { %2668 = vst.msk [vmem:[%s4442_s9 + $0x1e8] sm:$0xff] %vm1964_vm2, %v1961_v18  ;;  %3089 = vmatprep.mubr.msk.f32.mxu1 %vm1964_vm2, %v1961_v18 }
 0x390   : > { %2701 = vst.msk [vmem:[%s4442_s9 + $0x1e8] sm:$0xff] %vm2670_vm3, %v4360_v59 }
 0x392   : > { %v1963_v15 = vpop.permute.xlu1 %1962 }
 0x393   : > { %2669 = vst.msk [vmem:[%s4442_s9 + $0x1f8] sm:$0xff] %vm1964_vm2, %v1963_v15  ;;  %3090 = vmatmul.mubr.msk.f32.gmra.mxu1 %vm1964_vm2, %v1963_v15 }
 0x394   : > { %2702 = vst.msk [vmem:[%s4442_s9 + $0x1f8] sm:$0xff] %vm2670_vm3, %v5024_v16 }
 0x3de   : > { %v3046_v45 = vpop.f32.mrf.mxu1 }
 0x3df   : > { %v4648_v28 = vadd.f32 %v3046_v45, %v4645_v2 }
 0x3e0   : > { %v2095_v59 = vpop.f32.mrf.mxu1 }
 0x3e1   : > { %v4651_v31 = vadd.f32 %v2095_v59, %v4645_v2  ;;  %2256 = vmax.xlane.f32.xlu1 %v4648_v28 }
 0x3e3   : > { %2254 = vmax.xlane.f32.xlu0 %v4651_v31  ;;  %v3049_v5 = vpop.f32.mrf.mxu1 }
 0x3e4   : > { %v4656_v13 = vadd.f32 %v3049_v5, %v4645_v2 }
 0x3e5   : > { %v2105_v37 = vpop.f32.mrf.mxu1 }
 0x3e6   : > { %v4660_v44 = vadd.f32 %v2105_v37, %v4645_v2 }
 0x3e7   : > { %2260 = vmax.xlane.f32.xlu0 %v4656_v13 }
 0x3eb   : > { %2258 = vmax.xlane.f32.xlu0 %v4660_v44  ;;  %v3052_v55 = vpop.f32.mrf.mxu1 }
 0x3ec   : > { %v4664_v56 = vadd.f32 %v3052_v55, %v4645_v2 }
 0x3ed   : > { %v2115_v27 = vpop.f32.mrf.mxu1 }
 0x3ee   : > { %v4667_v58 = vadd.f32 %v2115_v27, %v4645_v2 }
 0x3ef   : > { %2264 = vmax.xlane.f32.xlu0 %v4664_v56 }
 0x3f0   : > { %2262 = vmax.xlane.f32.xlu1 %v4667_v58 }
 0x3f3   : > { %v3055_v49 = vpop.f32.mrf.mxu1 }
 0x3f4   : > { %v4672_v30 = vadd.f32 %v3055_v49, %v4645_v2 }
 0x3f5   : > { %v2125_v20 = vpop.f32.mrf.mxu1 }
 0x3f6   : > { %v4675_v61 = vadd.f32 %v2125_v20, %v4645_v2  ;;  %2268 = vmax.xlane.f32.xlu0 %v4672_v30 }
 0x3f8   : > { %2266 = vmax.xlane.f32.xlu1 %v4675_v61 }
 0x3fa   : > { %v3058_v36 = vpop.f32.mrf.mxu1 }
 0x3fb   : > { %v4680_v7 = vadd.f32 %v3058_v36, %v4645_v2 }
 0x3fc   : > { %v2135_v32 = vpop.f32.mrf.mxu1 }
 0x3fd   : > { %v4683_v6 = vadd.f32 %v2135_v32, %v4645_v2  ;;  %2272 = vmax.xlane.f32.xlu0 %v4680_v7 }
 0x3ff   : > { %2270 = vmax.xlane.f32.xlu1 %v4683_v6 }
 0x402   : > { %v3061_v57 = vpop.f32.mrf.mxu1 }
 0x403   : > { %v4688_v12 = vadd.f32 %v3061_v57, %v4645_v2 }
 0x404   : > { %v2145_v21 = vpop.f32.mrf.mxu1 }
 0x405   : > { %v4691_v50 = vadd.f32 %v2145_v21, %v4645_v2  ;;  %2276 = vmax.xlane.f32.xlu0 %v4688_v12 }
 0x407   : > { %2274 = vmax.xlane.f32.xlu1 %v4691_v50 }
 0x40b   : > { %v3064_v40 = vpop.f32.mrf.mxu1 }
 0x40c   : > { %v4696_v29 = vadd.f32 %v3064_v40, %v4645_v2 }
 0x40d   : > { %v2155_v0 = vpop.f32.mrf.mxu1 }
 0x40e   : > { %v4699_v11 = vadd.f32 %v2155_v0, %v4645_v2  ;;  %2280 = vmax.xlane.f32.xlu0 %v4696_v29 }
 0x410   : > { %2278 = vmax.xlane.f32.xlu1 %v4699_v11 }
 0x413   : > { %v3067_v47 = vpop.f32.mrf.mxu1 }
 0x414   : > { %v4704_v25 = vadd.f32 %v3067_v47, %v4645_v2 }
 0x415   : > { %v2165_v43 = vpop.f32.mrf.mxu1 }
 0x416   : > { %v4707_v9 = vadd.f32 %v2165_v43, %v4645_v2  ;;  %2284 = vmax.xlane.f32.xlu0 %v4704_v25 }
 0x418   : > { %2282 = vmax.xlane.f32.xlu1 %v4707_v9 }
 0x41a   : > { %v3070_v14 = vpop.f32.mrf.mxu1 }
 0x41b   : > { %v4712_v62 = vadd.f32 %v3070_v14, %v4645_v2 }
 0x41c   : > { %v2175_v52 = vpop.f32.mrf.mxu1 }
 0x41d   : > { %v4715_v48 = vadd.f32 %v2175_v52, %v4645_v2  ;;  %2288 = vmax.xlane.f32.xlu0 %v4712_v62 }
 0x41f   : > { %2286 = vmax.xlane.f32.xlu1 %v4715_v48 }
 0x422   : > { %v3073_v41 = vpop.f32.mrf.mxu1 }
 0x423   : > { %v4720_v26 = vadd.f32 %v3073_v41, %v4645_v2 }
 0x424   : > { %v2185_v17 = vpop.f32.mrf.mxu1 }
 0x425   : > { %v4723_v63 = vadd.f32 %v2185_v17, %v4645_v2  ;;  %2292 = vmax.xlane.f32.xlu0 %v4720_v26 }
 0x427   : > { %2290 = vmax.xlane.f32.xlu1 %v4723_v63 }
 0x42b   : > { %v3076_v34 = vpop.f32.mrf.mxu1 }
 0x42c   : > { %v4728_v24 = vadd.f32 %v3076_v34, %v4645_v2 }
 0x42d   : > { %v2195_v22 = vpop.f32.mrf.mxu1 }
 0x42e   : > { %v4731_v53 = vadd.f32 %v2195_v22, %v4645_v2  ;;  %2296 = vmax.xlane.f32.xlu0 %v4728_v24 }
 0x430   : > { %2294 = vmax.xlane.f32.xlu1 %v4731_v53 }
 0x433   : > { %v3079_v33 = vpop.f32.mrf.mxu1 }
 0x434   : > { %v4736_v35 = vadd.f32 %v3079_v33, %v4645_v2 }
 0x435   : > { %v2205_v42 = vpop.f32.mrf.mxu1 }
 0x436   : > { %v4739_v51 = vadd.f32 %v2205_v42, %v4645_v2  ;;  %2300 = vmax.xlane.f32.xlu0 %v4736_v35 }
 0x438   : > { %2298 = vmax.xlane.f32.xlu1 %v4739_v51 }
 0x43a   : > { %v3082_v46 = vpop.f32.mrf.mxu1 }
 0x43b   : > { %v4744_v3 = vadd.f32 %v3082_v46, %v4645_v2 }
 0x43c   : > { %v2215_v8 = vpop.f32.mrf.mxu1 }
 0x43d   : > { %v4747_v23 = vadd.f32 %v2215_v8, %v4645_v2  ;;  %2304 = vmax.xlane.f32.xlu0 %v4744_v3 }
 0x43f   : > { %2302 = vmax.xlane.f32.xlu1 %v4747_v23 }
 0x442   : > { %v3085_v54 = vpop.f32.mrf.mxu1 }
 0x443   : > { %v4752_v39 = vadd.f32 %v3085_v54, %v4645_v2 }
 0x444   : > { %v2225_v4 = vpop.f32.mrf.mxu1 }
 0x445   : > { %v4755_v60 = vadd.f32 %v2225_v4, %v4645_v2  ;;  %2308 = vmax.xlane.f32.xlu0 %v4752_v39 }
 0x447   : > { %2306 = vmax.xlane.f32.xlu1 %v4755_v60 }
 0x44b   : > { %v3088_v10 = vpop.f32.mrf.mxu1 }
 0x44c   : > { %v4760_v18 = vadd.f32 %v3088_v10, %v4645_v2 }
 0x44d   : > { %v2235_v15 = vpop.f32.mrf.mxu1 }
 0x44e   : > { %v4763_v16 = vadd.f32 %v2235_v15, %v4645_v2  ;;  %2312 = vmax.xlane.f32.xlu0 %v4760_v18 }
 0x450   : > { %2310 = vmax.xlane.f32.xlu1 %v4763_v16 }
 0x453   : > { %v3091_v1 = vpop.f32.mrf.mxu1 }
 0x454   : > { %v4768_v38 = vadd.f32 %v3091_v1, %v4645_v2 }
 0x455   : > { %v2245_v19 = vpop.f32.mrf.mxu1 }
 0x456   : > { %v4771_v45 = vadd.f32 %v2245_v19, %v4645_v2  ;;  %2316 = vmax.xlane.f32.xlu0 %v4768_v38 }
 0x458   : > { %2314 = vmax.xlane.f32.xlu1 %v4771_v45 }
 0x46a   : > { %v2257_v59 = vpop.xlane.xlu1 %2256 }
 0x46b   : > { %v4776_v5 = vsub.f32 %v4648_v28, %v2257_v59 }
 0x46c   : > { %v2255_v37 = vpop.xlane.xlu0 %2254 }
 0x46d   : > { %v2352_v55 = vmul.f32 1.442695, %v4776_v5  ;;  %v4780_v27 = vsub.f32 %v4651_v31, %v2255_v37 }
 0x46f   : > { %3296 = vpow2.f32 %v2352_v55  ;;  %v2350_v49 = vmul.f32 1.442695, %v4780_v27 }
 0x470   : > { %v2261_v20 = vpop.xlane.xlu0 %2260 }
 0x471   : > { %3298 = vpow2.f32 %v2350_v49  ;;  %v4784_v2 = vsub.f32 %v4656_v13, %v2261_v20 }
 0x473   : > { %v2356_v36 = vmul.f32 1.442695, %v4784_v2 }
 0x474   : > { %v2259_v32 = vpop.xlane.xlu0 %2258 }
 0x475   : > { %3300 = vpow2.f32 %v2356_v36  ;;  %v4788_v28 = vsub.f32 %v4660_v44, %v2259_v32 }
 0x477   : > { %v2354_v57 = vmul.f32 1.442695, %v4788_v28 }
 0x478   : > { %v2265_v21 = vpop.xlane.xlu0 %2264 }
 0x479   : > { %3302 = vpow2.f32 %v2354_v57  ;;  %v4792_v31 = vsub.f32 %v4664_v56, %v2265_v21  ;;  %v2263_v40 = vpop.xlane.xlu1 %2262 }
 0x47a   : > { %v4795_v0 = vsub.f32 %v4667_v58, %v2263_v40 }
 0x47b   : > { %v2360_v13 = vmul.f32 1.442695, %v4792_v31 }
 0x47c   : > { %v3297_v47 = vpop.eup %3296  ;;  %v2358_v43 = vmul.f32 1.442695, %v4795_v0 }
 0x47d   : > { %3304 = vpow2.f32 %v2360_v13  ;;  %2416 = vadd.xlane.f32.xlu0 %v3297_v47 }
 0x47e   : > { %v3299_v44 = vpop.eup %3298  ;;  %3306 = vpow2.f32 %v2358_v43 }
 0x47f   : > { %2414 = vadd.xlane.f32.xlu1 %v3299_v44  ;;  %v2269_v14 = vpop.xlane.xlu0 %2268 }
 0x480   : > { %v4800_v52 = vsub.f32 %v4672_v30, %v2269_v14 }
 0x481   : > { %v2267_v56 = vpop.xlane.xlu1 %2266 }
 0x482   : > { %v3301_v41 = vpop.eup %3300  ;;  %v2364_v17 = vmul.f32 1.442695, %v4800_v52  ;;  %v4804_v58 = vsub.f32 %v4675_v61, %v2267_v56 }
 0x483   : > { %2420 = vadd.xlane.f32.xlu0 %v3301_v41 }
 0x484   : > { %3308 = vpow2.f32 %v2364_v17  ;;  %v2362_v34 = vmul.f32 1.442695, %v4804_v58 }
 0x486   : > { %v3303_v22 = vpop.eup %3302  ;;  %3310 = vpow2.f32 %v2362_v34  ;;  %v2273_v33 = vpop.xlane.xlu0 %2272 }
 0x487   : > { %2418 = vadd.xlane.f32.xlu1 %v3303_v22  ;;  %v4808_v42 = vsub.f32 %v4680_v7, %v2273_v33 }
 0x488   : > { %v2271_v30 = vpop.xlane.xlu1 %2270 }
 0x489   : > { %v2368_v46 = vmul.f32 1.442695, %v4808_v42  ;;  %v4812_v8 = vsub.f32 %v4683_v6, %v2271_v30 }
 0x48a   : > { %v3305_v54 = vpop.eup %3304 }
 0x48b   : > { %v3307_v61 = vpop.eup %3306  ;;  %3312 = vpow2.f32 %v2368_v46  ;;  %v2366_v4 = vmul.f32 1.442695, %v4812_v8  ;;  %2424 = vadd.xlane.f32.xlu0 %v3305_v54 }
 0x48c   : > { %2422 = vadd.xlane.f32.xlu1 %v3307_v61 }
 0x48d   : > { %3314 = vpow2.f32 %v2366_v4 }
 0x48e   : > { %v2277_v10 = vpop.xlane.xlu0 %2276 }
 0x48f   : > { %v4816_v15 = vsub.f32 %v4688_v12, %v2277_v10 }
 0x490   : > { %v2275_v7 = vpop.xlane.xlu1 %2274 }
 0x491   : > { %v3309_v1 = vpop.eup %3308  ;;  %v2372_v19 = vmul.f32 1.442695, %v4816_v15  ;;  %v4820_v59 = vsub.f32 %v4691_v50, %v2275_v7 }
 0x492   : > { %2428 = vadd.xlane.f32.xlu0 %v3309_v1 }
 0x493   : > { %v3311_v6 = vpop.eup %3310  ;;  %3316 = vpow2.f32 %v2372_v19  ;;  %v2370_v37 = vmul.f32 1.442695, %v4820_v59 }
 0x494   : > { %2426 = vadd.xlane.f32.xlu1 %v3311_v6 }
 0x495   : > { %3318 = vpow2.f32 %v2370_v37 }
 0x497   : > { %v2281_v55 = vpop.xlane.xlu0 %2280 }
 0x498   : > { %v3313_v49 = vpop.eup %3312  ;;  %v4824_v20 = vsub.f32 %v4696_v29, %v2281_v55 }
 0x499   : > { %v2279_v12 = vpop.xlane.xlu1 %2278  ;;  %2432 = vadd.xlane.f32.xlu0 %v3313_v49 }
 0x49a   : > { %v3315_v36 = vpop.eup %3314  ;;  %v2376_v32 = vmul.f32 1.442695, %v4824_v20  ;;  %v4828_v50 = vsub.f32 %v4699_v11, %v2279_v12 }
 0x49b   : > { %2430 = vadd.xlane.f32.xlu1 %v3315_v36 }
 0x49c   : > { %3320 = vpow2.f32 %v2376_v32  ;;  %v2374_v57 = vmul.f32 1.442695, %v4828_v50 }
 0x49e   : > { %3322 = vpow2.f32 %v2374_v57 }
 0x49f   : > { %v2285_v21 = vpop.xlane.xlu0 %2284 }
 0x4a0   : > { %v3317_v40 = vpop.eup %3316  ;;  %v4832_v13 = vsub.f32 %v4704_v25, %v2285_v21 }
 0x4a1   : > { %v2283_v29 = vpop.xlane.xlu1 %2282  ;;  %2436 = vadd.xlane.f32.xlu0 %v3317_v40 }
 0x4a2   : > { %v3319_v47 = vpop.eup %3318  ;;  %v2380_v43 = vmul.f32 1.442695, %v4832_v13  ;;  %v4836_v44 = vsub.f32 %v4707_v9, %v2283_v29 }
 0x4a3   : > { %2434 = vadd.xlane.f32.xlu1 %v3319_v47 }
 0x4a4   : > { %3324 = vpow2.f32 %v2380_v43  ;;  %v2378_v11 = vmul.f32 1.442695, %v4836_v44 }
 0x4a6   : > { %3326 = vpow2.f32 %v2378_v11  ;;  %v2289_v14 = vpop.xlane.xlu0 %2288 }
 0x4a7   : > { %v4840_v56 = vsub.f32 %v4712_v62, %v2289_v14 }
 0x4a8   : > { %v2287_v41 = vpop.xlane.xlu1 %2286 }
 0x4a9   : > { %v3321_v25 = vpop.eup %3320  ;;  %v2384_v17 = vmul.f32 1.442695, %v4840_v56  ;;  %v4844_v34 = vsub.f32 %v4715_v48, %v2287_v41 }
 0x4aa   : > { %2440 = vadd.xlane.f32.xlu0 %v3321_v25 }
 0x4ab   : > { %v3323_v22 = vpop.eup %3322  ;;  %3328 = vpow2.f32 %v2384_v17  ;;  %v2382_v9 = vmul.f32 1.442695, %v4844_v34 }
 0x4ac   : > { %2438 = vadd.xlane.f32.xlu1 %v3323_v22 }
 0x4ad   : > { %3330 = vpow2.f32 %v2382_v9 }
 0x4ae   : > { %v2293_v33 = vpop.xlane.xlu0 %2292 }
 0x4af   : > { %v4848_v30 = vsub.f32 %v4720_v26, %v2293_v33 }
 0x4b0   : > { %v2291_v62 = vpop.xlane.xlu1 %2290 }
 0x4b1   : > { %v3325_v46 = vpop.eup %3324  ;;  %v2388_v54 = vmul.f32 1.442695, %v4848_v30  ;;  %v4852_v61 = vsub.f32 %v4723_v63, %v2291_v62 }
 0x4b2   : > { %2444 = vadd.xlane.f32.xlu0 %v3325_v46 }
 0x4b3   : > { %v3327_v48 = vpop.eup %3326  ;;  %3332 = vpow2.f32 %v2388_v54  ;;  %v2386_v4 = vmul.f32 1.442695, %v4852_v61 }
 0x4b4   : > { %2442 = vadd.xlane.f32.xlu1 %v3327_v48 }
 0x4b5   : > { %3334 = vpow2.f32 %v2386_v4 }
 0x4b7   : > { %v2297_v10 = vpop.xlane.xlu0 %2296 }
 0x4b8   : > { %v3329_v7 = vpop.eup %3328  ;;  %v4856_v1 = vsub.f32 %v4728_v24, %v2297_v10 }
 0x4b9   : > { %v2295_v26 = vpop.xlane.xlu1 %2294  ;;  %2448 = vadd.xlane.f32.xlu0 %v3329_v7 }
 0x4ba   : > { %v3331_v19 = vpop.eup %3330  ;;  %v2392_v6 = vmul.f32 1.442695, %v4856_v1  ;;  %v4860_v63 = vsub.f32 %v4731_v53, %v2295_v26 }
 0x4bb   : > { %2446 = vadd.xlane.f32.xlu1 %v3331_v19 }
 0x4bc   : > { %3336 = vpow2.f32 %v2392_v6  ;;  %v2390_v37 = vmul.f32 1.442695, %v4860_v63 }
 0x4be   : > { %3338 = vpow2.f32 %v2390_v37 }
 0x4bf   : > { %v2301_v55 = vpop.xlane.xlu0 %2300 }
 0x4c0   : > { %v3333_v49 = vpop.eup %3332  ;;  %v4864_v12 = vsub.f32 %v4736_v35, %v2301_v55 }
 0x4c1   : > { %v2299_v24 = vpop.xlane.xlu1 %2298  ;;  %2452 = vadd.xlane.f32.xlu0 %v3333_v49 }
 0x4c2   : > { %v3335_v36 = vpop.eup %3334  ;;  %v2396_v32 = vmul.f32 1.442695, %v4864_v12  ;;  %v4868_v57 = vsub.f32 %v4739_v51, %v2299_v24 }
 0x4c3   : > { %2450 = vadd.xlane.f32.xlu1 %v3335_v36 }
 0x4c4   : > { %3340 = vpow2.f32 %v2396_v32  ;;  %v2394_v53 = vmul.f32 1.442695, %v4868_v57 }
 0x4c6   : > { %3342 = vpow2.f32 %v2394_v53  ;;  %v2305_v21 = vpop.xlane.xlu0 %2304 }
 0x4c7   : > { %v4872_v40 = vsub.f32 %v4744_v3, %v2305_v21 }
 0x4c8   : > { %v2303_v29 = vpop.xlane.xlu1 %2302 }
 0x4c9   : > { %v3337_v35 = vpop.eup %3336  ;;  %v2400_v47 = vmul.f32 1.442695, %v4872_v40  ;;  %v4876_v43 = vsub.f32 %v4747_v23, %v2303_v29 }
 0x4ca   : > { %2456 = vadd.xlane.f32.xlu0 %v3337_v35 }
 0x4cb   : > { %v3339_v11 = vpop.eup %3338  ;;  %3344 = vpow2.f32 %v2400_v47  ;;  %v2398_v51 = vmul.f32 1.442695, %v4876_v43 }
 0x4cc   : > { %2454 = vadd.xlane.f32.xlu1 %v3339_v11 }
 0x4cd   : > { %3346 = vpow2.f32 %v2398_v51 }
 0x4ce   : > { %v2309_v14 = vpop.xlane.xlu0 %2308 }
 0x4cf   : > { %v4880_v41 = vsub.f32 %v4752_v39, %v2309_v14 }
 0x4d0   : > { %v2307_v3 = vpop.xlane.xlu1 %2306 }
 0x4d1   : > { %v3341_v25 = vpop.eup %3340  ;;  %v2404_v17 = vmul.f32 1.442695, %v4880_v41  ;;  %v4884_v22 = vsub.f32 %v4755_v60, %v2307_v3 }
 0x4d2   : > { %2460 = vadd.xlane.f32.xlu0 %v3341_v25 }
 0x4d3   : > { %v3343_v23 = vpop.eup %3342  ;;  %3348 = vpow2.f32 %v2404_v17  ;;  %v2402_v9 = vmul.f32 1.442695, %v4884_v22 }
 0x4d4   : > { %2458 = vadd.xlane.f32.xlu1 %v3343_v23 }
 0x4d5   : > { %3350 = vpow2.f32 %v2402_v9 }
 0x4d7   : > { %v2313_v33 = vpop.xlane.xlu0 %2312 }
 0x4d8   : > { %v3345_v62 = vpop.eup %3344  ;;  %v4888_v46 = vsub.f32 %v4760_v18, %v2313_v33 }
 0x4d9   : > { %v2311_v39 = vpop.xlane.xlu1 %2310  ;;  %2464 = vadd.xlane.f32.xlu0 %v3345_v62 }
 0x4da   : > { %v3347_v54 = vpop.eup %3346  ;;  %v2408_v48 = vmul.f32 1.442695, %v4888_v46  ;;  %v4892_v60 = vsub.f32 %v4763_v16, %v2311_v39 }
 0x4db   : > { %2462 = vadd.xlane.f32.xlu1 %v3347_v54 }
 0x4dc   : > { %3352 = vpow2.f32 %v2408_v48  ;;  %v2406_v4 = vmul.f32 1.442695, %v4892_v60 }
 0x4de   : > { %3354 = vpow2.f32 %v2406_v4 }
 0x4df   : > { %v2317_v10 = vpop.xlane.xlu0 %2316 }
 0x4e0   : > { %v3349_v7 = vpop.eup %3348  ;;  %v4896_v26 = vsub.f32 %v4768_v38, %v2317_v10 }
 0x4e1   : > { %v2315_v18 = vpop.xlane.xlu1 %2314  ;;  %2468 = vadd.xlane.f32.xlu0 %v3349_v7 }
 0x4e2   : > { %v3351_v19 = vpop.eup %3350  ;;  %v2412_v6 = vmul.f32 1.442695, %v4896_v26  ;;  %v4900_v37 = vsub.f32 %v4771_v45, %v2315_v18 }
 0x4e3   : > { %2466 = vadd.xlane.f32.xlu1 %v3351_v19 }
 0x4e4   : > { %3356 = vpow2.f32 %v2412_v6  ;;  %v2410_v16 = vmul.f32 1.442695, %v4900_v37 }
 0x4e6   : > { %3358 = vpow2.f32 %v2410_v16 }
 0x4e9   : > { %v3353_v55 = vpop.eup %3352 }
 0x4ea   : > { %2472 = vadd.xlane.f32.xlu0 %v3353_v55 }
 0x4eb   : > { %v3355_v49 = vpop.eup %3354 }
 0x4ec   : > { %2470 = vadd.xlane.f32.xlu1 %v3355_v49 }
 0x4f1   : > { %v3357_v24 = vpop.eup %3356 }
 0x4f2   : > { %2476 = vadd.xlane.f32.xlu0 %v3357_v24 }
 0x4f3   : > { %v3359_v38 = vpop.eup %3358 }
 0x4f4   : > { %2474 = vadd.xlane.f32.xlu1 %v3359_v38 }
 0x506   : > { %v2417_v36 = vpop.xlane.xlu0 %2416 }
 0x507   : > { %3360 = vlog2.f32 %v2417_v36 }
 0x508   : > { %v2415_v32 = vpop.xlane.xlu1 %2414 }
 0x509   : > { %3362 = vlog2.f32 %v2415_v32 }
 0x50c   : > { %v2421_v45 = vpop.xlane.xlu0 %2420 }
 0x50d   : > { %3364 = vlog2.f32 %v2421_v45 }
 0x510   : > { %v2419_v53 = vpop.xlane.xlu1 %2418 }
 0x511   : > { %3366 = vlog2.f32 %v2419_v53 }
 0x514   : > { %v3361_v21 = vpop.eup %3360  ;;  %v2425_v29 = vpop.xlane.xlu0 %2424 }
 0x515   : > { %v2481_v35 = vmul.f32 0.6931472, %v3361_v21  ;;  %3368 = vlog2.f32 %v2425_v29  ;;  %v2423_v47 = vpop.xlane.xlu1 %2422 }
 0x516   : > { %v3363_v11 = vpop.eup %3362  ;;  %3370 = vlog2.f32 %v2423_v47 }
 0x517   : > { %v2543_v51 = vsub.f32 %v4776_v5, %v2481_v35  ;;  %v2479_v14 = vmul.f32 0.6931472, %v3363_v11 }
 0x519   : > { %2575 = vst [vmem:[%s4442_s9 + $0x10] sm:$0xff] %v2543_v51  ;;  %v2542_v3 = vsub.f32 %v4780_v27, %v2479_v14 }
 0x51a   : > { %v3365_v25 = vpop.eup %3364 }
 0x51b   : > { %2574 = vst [vmem:[%s4442_s9] sm:$0xff] %v2542_v3  ;;  %v2485_v17 = vmul.f32 0.6931472, %v3365_v25  ;;  %v2429_v23 = vpop.xlane.xlu0 %2428 }
 0x51c   : > { %3372 = vlog2.f32 %v2429_v23 }
 0x51d   : > { %v2545_v9 = vsub.f32 %v4784_v2, %v2485_v17  ;;  %v2427_v33 = vpop.xlane.xlu1 %2426 }
 0x51e   : > { %v3367_v62 = vpop.eup %3366  ;;  %3374 = vlog2.f32 %v2427_v33 }
 0x51f   : > { %2577 = vst [vmem:[%s4442_s9 + $0x30] sm:$0xff] %v2545_v9  ;;  %v2483_v39 = vmul.f32 0.6931472, %v3367_v62 }
 0x521   : > { %v2544_v5 = vsub.f32 %v4788_v28, %v2483_v39 }
 0x522   : > { %v3369_v54 = vpop.eup %3368  ;;  %v2433_v48 = vpop.xlane.xlu0 %2432 }
 0x523   : > { %v3371_v27 = vpop.eup %3370  ;;  %2576 = vst [vmem:[%s4442_s9 + $0x20] sm:$0xff] %v2544_v5  ;;  %v2489_v4 = vmul.f32 0.6931472, %v3369_v54  ;;  %3376 = vlog2.f32 %v2433_v48 }
 0x524   : > { %v2487_v10 = vmul.f32 0.6931472, %v3371_v27  ;;  %v2431_v7 = vpop.xlane.xlu1 %2430 }
 0x525   : > { %v2547_v2 = vsub.f32 %v4792_v31, %v2489_v4  ;;  %3378 = vlog2.f32 %v2431_v7 }
 0x526   : > { %v2546_v18 = vsub.f32 %v4795_v0, %v2487_v10 }
 0x527   : > { %2579 = vst [vmem:[%s4442_s9 + $0x50] sm:$0xff] %v2547_v2 }
 0x528   : > { %2578 = vst [vmem:[%s4442_s9 + $0x40] sm:$0xff] %v2546_v18 }
 0x529   : > { %v3373_v19 = vpop.eup %3372 }
 0x52a   : > { %v2493_v6 = vmul.f32 0.6931472, %v3373_v19  ;;  %v2437_v28 = vpop.xlane.xlu0 %2436 }
 0x52b   : > { %v3375_v16 = vpop.eup %3374  ;;  %3380 = vlog2.f32 %v2437_v28 }
 0x52c   : > { %v2549_v55 = vsub.f32 %v4800_v52, %v2493_v6  ;;  %v2491_v49 = vmul.f32 0.6931472, %v3375_v16  ;;  %v2435_v24 = vpop.xlane.xlu1 %2434 }
 0x52d   : > { %3382 = vlog2.f32 %v2435_v24 }
 0x52e   : > { %2581 = vst [vmem:[%s4442_s9 + $0x70] sm:$0xff] %v2549_v55  ;;  %v2548_v31 = vsub.f32 %v4804_v58, %v2491_v49 }
 0x530   : > { %v3377_v38 = vpop.eup %3376  ;;  %2580 = vst [vmem:[%s4442_s9 + $0x60] sm:$0xff] %v2548_v31 }
 0x531   : > { %v2497_v0 = vmul.f32 0.6931472, %v3377_v38 }
 0x532   : > { %v3379_v36 = vpop.eup %3378 }
 0x533   : > { %v2551_v32 = vsub.f32 %v4808_v42, %v2497_v0  ;;  %v2495_v45 = vmul.f32 0.6931472, %v3379_v36  ;;  %v2441_v53 = vpop.xlane.xlu0 %2440 }
 0x534   : > { %3384 = vlog2.f32 %v2441_v53 }
 0x535   : > { %2583 = vst [vmem:[%s4442_s9 + $0x90] sm:$0xff] %v2551_v32  ;;  %v2550_v52 = vsub.f32 %v4812_v8, %v2495_v45  ;;  %v2439_v21 = vpop.xlane.xlu1 %2438 }
 0x536   : > { %3386 = vlog2.f32 %v2439_v21 }
 0x537   : > { %2582 = vst [vmem:[%s4442_s9 + $0x80] sm:$0xff] %v2550_v52 }
 0x538   : > { %v3381_v29 = vpop.eup %3380 }
 0x539   : > { %v2501_v35 = vmul.f32 0.6931472, %v3381_v29 }
 0x53a   : > { %v3383_v58 = vpop.eup %3382 }
 0x53b   : > { %v2553_v47 = vsub.f32 %v4816_v15, %v2501_v35  ;;  %v2499_v11 = vmul.f32 0.6931472, %v3383_v58  ;;  %v2445_v51 = vpop.xlane.xlu0 %2444 }
 0x53c   : > { %3388 = vlog2.f32 %v2445_v51 }
 0x53d   : > { %2585 = vst [vmem:[%s4442_s9 + $0xb0] sm:$0xff] %v2553_v47  ;;  %v2552_v42 = vsub.f32 %v4820_v59, %v2499_v11  ;;  %v2443_v14 = vpop.xlane.xlu1 %2442 }
 0x53e   : > { %3390 = vlog2.f32 %v2443_v14 }
 0x53f   : > { %2584 = vst [vmem:[%s4442_s9 + $0xa0] sm:$0xff] %v2552_v42 }
 0x541   : > { %v3385_v8 = vpop.eup %3384 }
 0x542   : > { %v2505_v3 = vmul.f32 0.6931472, %v3385_v8  ;;  %v2449_v25 = vpop.xlane.xlu0 %2448 }
 0x543   : > { %v3387_v17 = vpop.eup %3386  ;;  %3392 = vlog2.f32 %v2449_v25 }
 0x544   : > { %v2555_v23 = vsub.f32 %v4824_v20, %v2505_v3  ;;  %v2503_v15 = vmul.f32 0.6931472, %v3387_v17  ;;  %v2447_v9 = vpop.xlane.xlu1 %2446 }
 0x545   : > { %3394 = vlog2.f32 %v2447_v9 }
 0x546   : > { %2587 = vst [vmem:[%s4442_s9 + $0xd0] sm:$0xff] %v2555_v23  ;;  %v2554_v33 = vsub.f32 %v4828_v50, %v2503_v15 }
 0x548   : > { %2586 = vst [vmem:[%s4442_s9 + $0xc0] sm:$0xff] %v2554_v33 }
 0x549   : > { %v3389_v59 = vpop.eup %3388 }
 0x54a   : > { %v2509_v62 = vmul.f32 0.6931472, %v3389_v59  ;;  %v2453_v39 = vpop.xlane.xlu0 %2452 }
 0x54b   : > { %v3391_v5 = vpop.eup %3390  ;;  %3396 = vlog2.f32 %v2453_v39 }
 0x54c   : > { %v2557_v54 = vsub.f32 %v4832_v13, %v2509_v62  ;;  %v2507_v48 = vmul.f32 0.6931472, %v3391_v5  ;;  %v2451_v27 = vpop.xlane.xlu1 %2450 }
 0x54d   : > { %3398 = vlog2.f32 %v2451_v27 }
 0x54e   : > { %2589 = vst [vmem:[%s4442_s9 + $0xf0] sm:$0xff] %v2557_v54  ;;  %v2556_v20 = vsub.f32 %v4836_v44, %v2507_v48 }
 0x550   : > { %v3393_v4 = vpop.eup %3392  ;;  %2588 = vst [vmem:[%s4442_s9 + $0xe0] sm:$0xff] %v2556_v20 }
 0x551   : > { %v2513_v10 = vmul.f32 0.6931472, %v3393_v4 }
 0x552   : > { %v3395_v50 = vpop.eup %3394 }
 0x553   : > { %v2559_v7 = vsub.f32 %v4840_v56, %v2513_v10  ;;  %v2511_v2 = vmul.f32 0.6931472, %v3395_v50  ;;  %v2457_v18 = vpop.xlane.xlu0 %2456 }
 0x554   : > { %3400 = vlog2.f32 %v2457_v18 }
 0x555   : > { %2591 = vst [vmem:[%s4442_s9 + $0x110] sm:$0xff] %v2559_v7  ;;  %v2558_v13 = vsub.f32 %v4844_v34, %v2511_v2  ;;  %v2455_v19 = vpop.xlane.xlu1 %2454 }
 0x556   : > { %3402 = vlog2.f32 %v2455_v19 }
 0x557   : > { %2590 = vst [vmem:[%s4442_s9 + $0x100] sm:$0xff] %v2558_v13 }
 0x558   : > { %v3397_v6 = vpop.eup %3396 }
 0x559   : > { %v2517_v28 = vmul.f32 0.6931472, %v3397_v6 }
 0x55a   : > { %v3399_v44 = vpop.eup %3398 }
 0x55b   : > { %v2561_v16 = vsub.f32 %v4848_v30, %v2517_v28  ;;  %v2515_v55 = vmul.f32 0.6931472, %v3399_v44  ;;  %v2461_v49 = vpop.xlane.xlu0 %2460 }
 0x55c   : > { %3404 = vlog2.f32 %v2461_v49 }
 0x55d   : > { %2593 = vst [vmem:[%s4442_s9 + $0x130] sm:$0xff] %v2561_v16  ;;  %v2560_v56 = vsub.f32 %v4852_v61, %v2515_v55  ;;  %v2459_v24 = vpop.xlane.xlu1 %2458 }
 0x55e   : > { %3406 = vlog2.f32 %v2459_v24 }
 0x55f   : > { %2592 = vst [vmem:[%s4442_s9 + $0x120] sm:$0xff] %v2560_v56 }
 0x561   : > { %v3401_v34 = vpop.eup %3400 }
 0x562   : > { %v2521_v31 = vmul.f32 0.6931472, %v3401_v34  ;;  %v2465_v38 = vpop.xlane.xlu0 %2464 }
 0x563   : > { %v3403_v0 = vpop.eup %3402  ;;  %3408 = vlog2.f32 %v2465_v38 }
 0x564   : > { %v2563_v36 = vsub.f32 %v4856_v1, %v2521_v31  ;;  %v2519_v30 = vmul.f32 0.6931472, %v3403_v0  ;;  %v2463_v32 = vpop.xlane.xlu1 %2462 }
 0x565   : > { %3410 = vlog2.f32 %v2463_v32 }
 0x566   : > { %2595 = vst [vmem:[%s4442_s9 + $0x150] sm:$0xff] %v2563_v36  ;;  %v2562_v45 = vsub.f32 %v4860_v63, %v2519_v30 }
 0x568   : > { %2594 = vst [vmem:[%s4442_s9 + $0x140] sm:$0xff] %v2562_v45 }
 0x569   : > { %v3405_v61 = vpop.eup %3404 }
 0x56a   : > { %v2525_v53 = vmul.f32 0.6931472, %v3405_v61  ;;  %v2469_v52 = vpop.xlane.xlu0 %2468 }
 0x56b   : > { %v3407_v21 = vpop.eup %3406  ;;  %3412 = vlog2.f32 %v2469_v52 }
 0x56c   : > { %v2565_v29 = vsub.f32 %v4864_v12, %v2525_v53  ;;  %v2523_v35 = vmul.f32 0.6931472, %v3407_v21  ;;  %v2467_v58 = vpop.xlane.xlu1 %2466 }
 0x56d   : > { %3414 = vlog2.f32 %v2467_v58 }
 0x56e   : > { %2597 = vst [vmem:[%s4442_s9 + $0x170] sm:$0xff] %v2565_v29  ;;  %v2564_v1 = vsub.f32 %v4868_v57, %v2523_v35 }
 0x570   : > { %v3409_v47 = vpop.eup %3408  ;;  %2596 = vst [vmem:[%s4442_s9 + $0x160] sm:$0xff] %v2564_v1 }
 0x571   : > { %v2529_v11 = vmul.f32 0.6931472, %v3409_v47 }
 0x572   : > { %v3411_v63 = vpop.eup %3410 }
 0x573   : > { %v2567_v51 = vsub.f32 %v4872_v40, %v2529_v11  ;;  %v2527_v42 = vmul.f32 0.6931472, %v3411_v63  ;;  %v2473_v14 = vpop.xlane.xlu0 %2472 }
 0x574   : > { %3416 = vlog2.f32 %v2473_v14 }
 0x575   : > { %2599 = vst [vmem:[%s4442_s9 + $0x190] sm:$0xff] %v2567_v51  ;;  %v2566_v12 = vsub.f32 %v4876_v43, %v2527_v42  ;;  %v2471_v8 = vpop.xlane.xlu1 %2470 }
 0x576   : > { %3418 = vlog2.f32 %v2471_v8 }
 0x577   : > { %2598 = vst [vmem:[%s4442_s9 + $0x180] sm:$0xff] %v2566_v12 }
 0x578   : > { %v3413_v3 = vpop.eup %3412 }
 0x579   : > { %v2533_v25 = vmul.f32 0.6931472, %v3413_v3 }
 0x57a   : > { %v3415_v57 = vpop.eup %3414 }
 0x57b   : > { %v2569_v17 = vsub.f32 %v4880_v41, %v2533_v25  ;;  %v2531_v23 = vmul.f32 0.6931472, %v3415_v57  ;;  %v2477_v40 = vpop.xlane.xlu0 %2476 }
 0x57c   : > { %3420 = vlog2.f32 %v2477_v40 }
 0x57d   : > { %2601 = vst [vmem:[%s4442_s9 + $0x1b0] sm:$0xff] %v2569_v17  ;;  %v2568_v15 = vsub.f32 %v4884_v22, %v2531_v23  ;;  %v2475_v9 = vpop.xlane.xlu1 %2474 }
 0x57e   : > { %3422 = vlog2.f32 %v2475_v9 }
 0x57f   : > { %2600 = vst [vmem:[%s4442_s9 + $0x1a0] sm:$0xff] %v2568_v15 }
 0x581   : > { %v3417_v43 = vpop.eup %3416 }
 0x582   : > { %v2537_v33 = vmul.f32 0.6931472, %v3417_v43 }
 0x583   : > { %v3419_v59 = vpop.eup %3418 }
 0x584   : > { %v2571_v62 = vsub.f32 %v4888_v46, %v2537_v33  ;;  %v2535_v39 = vmul.f32 0.6931472, %v3419_v59 }
 0x586   : > { %2603 = vst [vmem:[%s4442_s9 + $0x1d0] sm:$0xff] %v2571_v62  ;;  %v2570_v41 = vsub.f32 %v4892_v60, %v2535_v39 }
 0x588   : > { %2602 = vst [vmem:[%s4442_s9 + $0x1c0] sm:$0xff] %v2570_v41 }
 0x589   : > { %v3421_v5 = vpop.eup %3420 }
 0x58a   : > { %v2541_v54 = vmul.f32 0.6931472, %v3421_v5 }
 0x58b   : > { %v3423_v48 = vpop.eup %3422 }
 0x58c   : > { %v2573_v22 = vsub.f32 %v4896_v26, %v2541_v54  ;;  %v2539_v27 = vmul.f32 0.6931472, %v3423_v48 }
 0x58e   : > { %2605 = vst [vmem:[%s4442_s9 + $0x1f0] sm:$0xff] %v2573_v22  ;;  %v2572_v20 = vsub.f32 %v4900_v37, %v2539_v27 }
 0x590   : > { %2604 = vst [vmem:[%s4442_s9 + $0x1e0] sm:$0xff] %v2572_v20 }
 0x591 PF: > { %s13_s12 = sadd.s32 1, %s3431_s12  }
 0x592   : > { %p10_p4 = scmp.ge.s32.totalorder %s13_s12, 4  }
 0x594   :  { %12 = sbr.rel (!%p10_p4) target bundleno = 1 (0x1), region = 62 }

</bundles_post_ra>
